<compile_context>
chip_gen: v7x
topology: tpu7x:2x2x1
jax: 0.10.0
libtpu: 0.0.40
codegen_flags: <defaults>
</compile_context>

<pallas_src>
import functools

import jax
import jax.numpy as jnp
from jax.experimental import pallas as pl
from jax.experimental.pallas import tpu as pltpu


def _round_up(x, m):
    return ((x + m - 1) // m) * m


def _cdiv(a, b):
    return -(-a // b)


# Problems with fewer rows than this are served by the plain-JAX fallback.
_MIN_PALLAS_ROWS = 512


def _pick_tm(M, H):
    """Row-tile size: >= 2 grid steps where possible (v7x has 2 TensorCores),
    capped at 1024 rows and at a working-set-friendly size for large H."""
    M8 = _round_up(max(M, 1), 8)
    if M8 <= 16:
        tm = M8
    elif M8 <= 512:
        tm = _round_up(_cdiv(M8, 2), 8)               # two grid steps
    else:
        tm = min(1024, _round_up(_cdiv(M8, 2), 256))  # MXU row granules full
    # Keep the per-step live set (~16 f32 (tm, H) tiles) well inside scoped
    # VMEM on every generation (v7x: 64 MiB physical per TensorCore).
    cap = max(256, ((12 * 1024 * 1024) // max(1, 16 * 4 * H)) // 8 * 8)
    return max(8, min(tm, cap))


def _vmem_budget(tm, D, H):
    """Tight VMEM budget: double-buffered row streams + resident weights +
    headroom for the live f32 gate tiles the compiler keeps in scratch."""
    stream_in = 2 * tm * (D + 3 * H) * 4          # x + 3 states, double-buffered
    stream_out = 2 * tm * H * 4                   # output, double-buffered
    resident = 3 * (D * H + H * H) * 2 + 4 * H * 4
    scratch = 8 * tm * H * 4                      # h, r, z, n, gi/gh tiles
    budget = int(1.5 * (stream_in + stream_out + resident + scratch)) + (1 << 20)
    return min(48 * 1024 * 1024, max(4 * 1024 * 1024, budget))


# ----------------------------------------------------------------------------
# Pallas kernel: fused (weighted state mix) + GRUCell, one TM-row tile per step
# ----------------------------------------------------------------------------
def _gru_fuse_kernel(w_ref,                            # SMEM (3,)   softmax(h_t_weights)
                     x_ref,                            # VMEM (TM, D)  f32
                     st_ref, ss_ref, se_ref,           # VMEM (TM, H)  f32
                     wih_r_ref, wih_z_ref, wih_n_ref,  # VMEM (D, H) bf16 (resident)
                     whh_r_ref, whh_z_ref, whh_n_ref,  # VMEM (H, H) bf16 (resident)
                     br_ref, bz_ref, bin_ref, bhn_ref,  # VMEM (1, H) f32 (resident)
                     out_ref):                          # VMEM (TM, H)  f32
    f32 = jnp.float32

    w0 = w_ref[0]
    w1 = w_ref[1]
    w2 = w_ref[2]

    # Weighted hidden-state fusion in f32 on the VPU (v5e has no bf16 VPU/EUP).
    h = w0 * st_ref[...] + w1 * ss_ref[...] + w2 * se_ref[...]

    # bf16 operands for the MXU; f32 accumulation.
    x_bf = x_ref[...].astype(jnp.bfloat16)
    h_bf = h.astype(jnp.bfloat16)

    def pre(wih_ref, whh_ref):
        gi = jnp.dot(x_bf, wih_ref[...], preferred_element_type=f32)
        gh = jnp.dot(h_bf, whh_ref[...], preferred_element_type=f32)
        return gi, gh

    def sigmoid(a):                 # one EUP op instead of exp + reciprocal
        return 0.5 * jnp.tanh(0.5 * a) + 0.5

    # Per-gate matmuls: each result is a (TM, H) tile consumed immediately,
    # so no (TM, 3H) intermediate is ever live (less spill traffic).
    gi_r, gh_r = pre(wih_r_ref, whh_r_ref)
    r = sigmoid(gi_r + gh_r + br_ref[...])
    gi_z, gh_z = pre(wih_z_ref, whh_z_ref)
    z = sigmoid(gi_z + gh_z + bz_ref[...])
    gi_n, gh_n = pre(wih_n_ref, whh_n_ref)
    n = jnp.tanh(gi_n + bin_ref[...] + r * (gh_n + bhn_ref[...]))

    out_ref[...] = ((1.0 - z) * n + z * h).astype(out_ref.dtype)


def _gru_fuse_pallas(w, x, st, ss, se,
                     wih_r, wih_z, wih_n, whh_r, whh_z, whh_n,
                     b_r, b_z, b_in, b_hn, *, tm):
    M, D = x.shape
    H = st.shape[-1]
    grid = (pl.cdiv(M, tm),)   # ragged last tile handled by Pallas masking

    row = lambda last: pl.BlockSpec((tm, last), lambda i: (i, 0))
    resident = lambda shape: pl.BlockSpec(shape, lambda i: (0, 0))

    return pl.pallas_call(
        _gru_fuse_kernel,
        out_shape=jax.ShapeDtypeStruct((M, H), jnp.float32),
        grid_spec=pltpu.PrefetchScalarGridSpec(
            num_scalar_prefetch=0,
            grid=grid,
            in_specs=[
                pl.BlockSpec(memory_space=pltpu.MemorySpace.SMEM),  # w (3,)
                row(D),                        # x
                row(H), row(H), row(H),        # state_t, state_s, state_e
                resident((D, H)), resident((D, H)), resident((D, H)),  # Wih r/z/n
                resident((H, H)), resident((H, H)), resident((H, H)),  # Whh r/z/n
                resident((1, H)),              # b_r = b_ir + b_hr
                resident((1, H)),              # b_z = b_iz + b_hz
                resident((1, H)),              # b_in
                resident((1, H)),              # b_hn
            ],
            out_specs=row(H),
        ),
        compiler_params=pltpu.CompilerParams(
            dimension_semantics=("parallel",),
            vmem_limit_bytes=_vmem_budget(tm, D, H),
        ),
    )(w, x, st, ss, se, wih_r, wih_z, wih_n, whh_r, whh_z, whh_n,
      b_r, b_z, b_in, b_hn)


# ----------------------------------------------------------------------------
# MVCVTNCell (JAX wrapper around the Pallas kernel)
# ----------------------------------------------------------------------------
class MVCVTNCellPallas:
    def __init__(self, input_dim, hidden_dim, feat_dim, num_nodes,
                 max_diffusion_step, num_heads, key):
        self.input_dim = input_dim
        self.hidden_dim = hidden_dim
        self.feat_dim = feat_dim
        self.num_nodes = num_nodes
        self.h_num = 3

        k1, k2, k3, k4 = jax.random.split(key, 4)
        bound = 1.0 / jnp.sqrt(hidden_dim)
        # nn.GRUCell parameters (PyTorch layout: rows ordered [r; z; n]).
        self.weight_ih = jax.random.uniform(k1, (3 * hidden_dim, input_dim),
                                            minval=-bound, maxval=bound,
                                            dtype=jnp.float32)
        self.weight_hh = jax.random.uniform(k2, (3 * hidden_dim, hidden_dim),
                                            minval=-bound, maxval=bound,
                                            dtype=jnp.float32)
        self.bias_ih = jax.random.uniform(k3, (3 * hidden_dim,),
                                          minval=-bound, maxval=bound,
                                          dtype=jnp.float32)
        self.bias_hh = jax.random.uniform(k4, (3 * hidden_dim,),
                                          minval=-bound, maxval=bound,
                                          dtype=jnp.float32)
        # h_t_weights initialized to 1/h_num (reset_parameters).
        self.h_t_weights = jnp.full((self.h_num,), 1.0 / self.h_num,
                                    dtype=jnp.float32)

        # Kernel-layout params: pre-transposed, pre-split per gate, bf16.
        H = hidden_dim
        wih_t = self.weight_ih.T            # (D, 3H), columns ordered [r | z | n]
        whh_t = self.weight_hh.T            # (H, 3H)
        gate = lambda w, g: w[:, g * H:(g + 1) * H].astype(jnp.bfloat16)
        self.wih_r, self.wih_z, self.wih_n = [gate(wih_t, g) for g in range(3)]
        self.whh_r, self.whh_z, self.whh_n = [gate(whh_t, g) for g in range(3)]

        row = lambda b: b.reshape(1, H).astype(jnp.float32)
        self.b_r = row(self.bias_ih[0:H] + self.bias_hh[0:H])
        self.b_z = row(self.bias_ih[H:2 * H] + self.bias_hh[H:2 * H])
        self.b_in = row(self.bias_ih[2 * H:3 * H])
        self.b_hn = row(self.bias_hh[2 * H:3 * H])

    @functools.partial(jax.jit, static_argnums=0)
    def forward(self, inputs, envs_feat, state_t, state_s, state_e):
        # inputs: (B, N, input_dim); states: (B, N, hidden_dim)
        del envs_feat  # TODO(synk): consumed only by the (omitted) GAT branch.
        B, N, D = inputs.shape
        H = self.hidden_dim
        M = B * N

        w = jax.nn.softmax(self.h_t_weights)   # parameter glue, plain JAX
        x = inputs.reshape(M, D)
        st = state_t.reshape(M, H)
        ss = state_s.reshape(M, H)
        se = state_e.reshape(M, H)

        if M < _MIN_PALLAS_ROWS:
            # Tiny problem: launch/pipeline overhead dominates a Pallas call.
            h = w[0] * st + w[1] * ss + w[2] * se
            gi = x @ self.weight_ih.T + self.bias_ih
            gh = h @ self.weight_hh.T + self.bias_hh
            i_r, i_z, i_n = jnp.split(gi, 3, axis=-1)
            h_r, h_z, h_n = jnp.split(gh, 3, axis=-1)
            r = jax.nn.sigmoid(i_r + h_r)
            z = jax.nn.sigmoid(i_z + h_z)
            n = jnp.tanh(i_n + r * h_n)
            out = (1.0 - z) * n + z * h
        else:
            out = _gru_fuse_pallas(
                w, x, st, ss, se,
                self.wih_r, self.wih_z, self.wih_n,
                self.whh_r, self.whh_z, self.whh_n,
                self.b_r, self.b_z, self.b_in, self.b_hn,
                tm=_pick_tm(M, H))

        output_t = out.reshape(B, N, H)

        # TODO(synk): DGCN / GAT sub-module definitions were not provided in
        # the source module, so output_s / output_e cannot be reproduced.
        output_s = output_t
        output_e = output_t
        return output_t, output_s, output_e


# ----------------------------------------------------------------------------
# Pure-JAX reference (mirrors the kernel numerics: bf16 MXU operands, f32 math)
# ----------------------------------------------------------------------------
def _reference(cell, inputs, state_t, state_s, state_e):
    B, N, D = inputs.shape
    H = cell.hidden_dim
    f32 = jnp.float32
    rnd = lambda a: a.astype(jnp.bfloat16).astype(f32)   # bf16-rounded operand

    w = jax.nn.softmax(cell.h_t_weights)
    h = (w[0] * state_t + w[1] * state_s + w[2] * state_e).reshape(-1, H)
    x = inputs.reshape(-1, D)

    gi = jnp.dot(rnd(x), rnd(cell.weight_ih).T, preferred_element_type=f32)
    gh = jnp.dot(rnd(h), rnd(cell.weight_hh).T, preferred_element_type=f32)

    i_r, i_z, i_n = jnp.split(gi, 3, axis=-1)
    h_r, h_z, h_n = jnp.split(gh, 3, axis=-1)
    b_ir, b_iz, b_in = jnp.split(cell.bias_ih, 3)
    b_hr, b_hz, b_hn = jnp.split(cell.bias_hh, 3)

    r = jax.nn.sigmoid(i_r + h_r + b_ir + b_hr)
    z = jax.nn.sigmoid(i_z + h_z + b_iz + b_hz)
    n = jnp.tanh(i_n + b_in + r * (h_n + b_hn))
    out = (1.0 - z) * n + z * h
    return out.reshape(B, N, H)


# ----------------------------------------------------------------------------
if __name__ == "__main__":
    key = jax.random.PRNGKey(0)
    k_param, k_x, k_f, k_t, k_s, k_e = jax.random.split(key, 6)

    batch = 4
    num_nodes = 128          # M = 512 rows -> Pallas path, 2-step parallel grid
    input_dim = 4
    hidden_dim = 32
    feat_dim = 8
    num_heads = 2
    max_diffusion_step = 2

    cell = MVCVTNCellPallas(input_dim, hidden_dim, feat_dim, num_nodes,
                            max_diffusion_step, num_heads, k_param)

    inputs = jax.random.normal(k_x, (batch, num_nodes, input_dim), jnp.float32)
    envs_feat = jax.random.normal(k_f, (batch, num_nodes, feat_dim), jnp.float32)
    state_t = jax.random.normal(k_t, (batch, num_nodes, hidden_dim), jnp.float32)
    state_s = jax.random.normal(k_s, (batch, num_nodes, hidden_dim), jnp.float32)
    state_e = jax.random.normal(k_e, (batch, num_nodes, hidden_dim), jnp.float32)

    out_t, out_s, out_e = cell.forward(inputs, envs_feat,
                                       state_t, state_s, state_e)
    jax.block_until_ready((out_t, out_s, out_e))

    ref_t = _reference(cell, inputs, state_t, state_s, state_e)
    assert out_t.shape == (batch, num_nodes, hidden_dim)
    assert out_t.dtype == jnp.float32
    assert jnp.allclose(out_t, ref_t, atol=1e-2, rtol=1e-2), "mismatch vs reference"

    print("KERNEL_OK")
</pallas_src>

<mosaic_0001>
module attributes {stable_mosaic.version = 11 : i64} {
  func.func @_gru_fuse_kernel(%arg0: i32, %arg1: memref<3xf32, #tpu.memory_space<smem>>, %arg2: memref<256x4xf32, #tpu.memory_space<vmem>>, %arg3: memref<256x32xf32, #tpu.memory_space<vmem>>, %arg4: memref<256x32xf32, #tpu.memory_space<vmem>>, %arg5: memref<256x32xf32, #tpu.memory_space<vmem>>, %arg6: memref<4x32xbf16, #tpu.memory_space<vmem>>, %arg7: memref<4x32xbf16, #tpu.memory_space<vmem>>, %arg8: memref<4x32xbf16, #tpu.memory_space<vmem>>, %arg9: memref<32x32xbf16, #tpu.memory_space<vmem>>, %arg10: memref<32x32xbf16, #tpu.memory_space<vmem>>, %arg11: memref<32x32xbf16, #tpu.memory_space<vmem>>, %arg12: memref<1x32xf32, #tpu.memory_space<vmem>>, %arg13: memref<1x32xf32, #tpu.memory_space<vmem>>, %arg14: memref<1x32xf32, #tpu.memory_space<vmem>>, %arg15: memref<1x32xf32, #tpu.memory_space<vmem>>, %arg16: memref<256x32xf32, #tpu.memory_space<vmem>>) attributes {dimension_semantics = [#tpu.dimension_semantics<parallel>], iteration_bounds = array<i64: 2>, scalar_prefetch = 0 : i64, scratch_operands = 0 : i64, tpu.core_type = #tpu.core_type<tc>, window_params = [{transform_indices = @transform_0, window_bounds = array<i64: 3>}, {transform_indices = @transform_1, window_bounds = array<i64: 256, 4>}, {transform_indices = @transform_2, window_bounds = array<i64: 256, 32>}, {transform_indices = @transform_3, window_bounds = array<i64: 256, 32>}, {transform_indices = @transform_4, window_bounds = array<i64: 256, 32>}, {pipeline_mode = #tpu.pipeline_mode<synchronous>, transform_indices = @transform_5, window_bounds = array<i64: 4, 32>}, {pipeline_mode = #tpu.pipeline_mode<synchronous>, transform_indices = @transform_6, window_bounds = array<i64: 4, 32>}, {pipeline_mode = #tpu.pipeline_mode<synchronous>, transform_indices = @transform_7, window_bounds = array<i64: 4, 32>}, {pipeline_mode = #tpu.pipeline_mode<synchronous>, transform_indices = @transform_8, window_bounds = array<i64: 32, 32>}, {pipeline_mode = #tpu.pipeline_mode<synchronous>, transform_indices = @transform_9, window_bounds = array<i64: 32, 32>}, {pipeline_mode = #tpu.pipeline_mode<synchronous>, transform_indices = @transform_10, window_bounds = array<i64: 32, 32>}, {pipeline_mode = #tpu.pipeline_mode<synchronous>, transform_indices = @transform_11, window_bounds = array<i64: 1, 32>}, {pipeline_mode = #tpu.pipeline_mode<synchronous>, transform_indices = @transform_12, window_bounds = array<i64: 1, 32>}, {pipeline_mode = #tpu.pipeline_mode<synchronous>, transform_indices = @transform_13, window_bounds = array<i64: 1, 32>}, {pipeline_mode = #tpu.pipeline_mode<synchronous>, transform_indices = @transform_14, window_bounds = array<i64: 1, 32>}, {transform_indices = @transform_15, window_bounds = array<i64: 256, 32>}]} {
    %c0 = arith.constant 0 : index
    %0 = memref.load %arg1[%c0] : memref<3xf32, #tpu.memory_space<smem>>
    %c1 = arith.constant 1 : index
    %1 = memref.load %arg1[%c1] : memref<3xf32, #tpu.memory_space<smem>>
    %c2 = arith.constant 2 : index
    %2 = memref.load %arg1[%c2] : memref<3xf32, #tpu.memory_space<smem>>
    %c0_0 = arith.constant 0 : index
    %c0_1 = arith.constant 0 : index
    %3 = vector.load %arg3[%c0_0, %c0_1] : memref<256x32xf32, #tpu.memory_space<vmem>>, vector<256x32xf32>
    %4 = vector.broadcast %0 : f32 to vector<256x32xf32>
    %5 = arith.mulf %4, %3 : vector<256x32xf32>
    %c0_2 = arith.constant 0 : index
    %c0_3 = arith.constant 0 : index
    %6 = vector.load %arg4[%c0_2, %c0_3] : memref<256x32xf32, #tpu.memory_space<vmem>>, vector<256x32xf32>
    %7 = vector.broadcast %1 : f32 to vector<256x32xf32>
    %8 = arith.mulf %7, %6 : vector<256x32xf32>
    %9 = arith.addf %5, %8 : vector<256x32xf32>
    %c0_4 = arith.constant 0 : index
    %c0_5 = arith.constant 0 : index
    %10 = vector.load %arg5[%c0_4, %c0_5] : memref<256x32xf32, #tpu.memory_space<vmem>>, vector<256x32xf32>
    %11 = vector.broadcast %2 : f32 to vector<256x32xf32>
    %12 = arith.mulf %11, %10 : vector<256x32xf32>
    %13 = arith.addf %9, %12 : vector<256x32xf32>
    %c0_6 = arith.constant 0 : index
    %c0_7 = arith.constant 0 : index
    %14 = vector.load %arg2[%c0_6, %c0_7] : memref<256x4xf32, #tpu.memory_space<vmem>>, vector<256x4xf32>
    %15 = arith.truncf %14 : vector<256x4xf32> to vector<256x4xbf16>
    %16 = arith.truncf %13 : vector<256x32xf32> to vector<256x32xbf16>
    %c0_8 = arith.constant 0 : index
    %c0_9 = arith.constant 0 : index
    %17 = vector.load %arg6[%c0_8, %c0_9] : memref<4x32xbf16, #tpu.memory_space<vmem>>, vector<4x32xbf16>
    %cst = arith.constant dense<0.000000e+00> : vector<256x32xf32>
    %18 = tpu.matmul %15, %17, %cst {dimension_numbers = #tpu.dot_dimension_numbers<[1], [0], [0], [1], [0, 0, 1, 1], [], []>} : vector<256x4xbf16>, vector<4x32xbf16>, vector<256x32xf32> -> vector<256x32xf32>
    %c0_10 = arith.constant 0 : index
    %c0_11 = arith.constant 0 : index
    %19 = vector.load %arg9[%c0_10, %c0_11] : memref<32x32xbf16, #tpu.memory_space<vmem>>, vector<32x32xbf16>
    %cst_12 = arith.constant dense<0.000000e+00> : vector<256x32xf32>
    %20 = tpu.matmul %16, %19, %cst_12 {dimension_numbers = #tpu.dot_dimension_numbers<[1], [0], [0], [1], [0, 0, 1, 1], [], []>} : vector<256x32xbf16>, vector<32x32xbf16>, vector<256x32xf32> -> vector<256x32xf32>
    %21 = arith.addf %18, %20 : vector<256x32xf32>
    %c0_13 = arith.constant 0 : index
    %c0_14 = arith.constant 0 : index
    %22 = vector.load %arg12[%c0_13, %c0_14] : memref<1x32xf32, #tpu.memory_space<vmem>>, vector<1x32xf32>
    %23 = vector.broadcast %22 : vector<1x32xf32> to vector<256x32xf32>
    %24 = arith.addf %21, %23 : vector<256x32xf32>
    %cst_15 = arith.constant 5.000000e-01 : f32
    %25 = vector.broadcast %cst_15 : f32 to vector<256x32xf32>
    %26 = arith.mulf %25, %24 : vector<256x32xf32>
    %27 = math.tanh %26 : vector<256x32xf32>
    %cst_16 = arith.constant 5.000000e-01 : f32
    %28 = vector.broadcast %cst_16 : f32 to vector<256x32xf32>
    %29 = arith.mulf %28, %27 : vector<256x32xf32>
    %cst_17 = arith.constant 5.000000e-01 : f32
    %30 = vector.broadcast %cst_17 : f32 to vector<256x32xf32>
    %31 = arith.addf %29, %30 : vector<256x32xf32>
    %c0_18 = arith.constant 0 : index
    %c0_19 = arith.constant 0 : index
    %32 = vector.load %arg7[%c0_18, %c0_19] : memref<4x32xbf16, #tpu.memory_space<vmem>>, vector<4x32xbf16>
    %cst_20 = arith.constant dense<0.000000e+00> : vector<256x32xf32>
    %33 = tpu.matmul %15, %32, %cst_20 {dimension_numbers = #tpu.dot_dimension_numbers<[1], [0], [0], [1], [0, 0, 1, 1], [], []>} : vector<256x4xbf16>, vector<4x32xbf16>, vector<256x32xf32> -> vector<256x32xf32>
    %c0_21 = arith.constant 0 : index
    %c0_22 = arith.constant 0 : index
    %34 = vector.load %arg10[%c0_21, %c0_22] : memref<32x32xbf16, #tpu.memory_space<vmem>>, vector<32x32xbf16>
    %cst_23 = arith.constant dense<0.000000e+00> : vector<256x32xf32>
    %35 = tpu.matmul %16, %34, %cst_23 {dimension_numbers = #tpu.dot_dimension_numbers<[1], [0], [0], [1], [0, 0, 1, 1], [], []>} : vector<256x32xbf16>, vector<32x32xbf16>, vector<256x32xf32> -> vector<256x32xf32>
    %36 = arith.addf %33, %35 : vector<256x32xf32>
    %c0_24 = arith.constant 0 : index
    %c0_25 = arith.constant 0 : index
    %37 = vector.load %arg13[%c0_24, %c0_25] : memref<1x32xf32, #tpu.memory_space<vmem>>, vector<1x32xf32>
    %38 = vector.broadcast %37 : vector<1x32xf32> to vector<256x32xf32>
    %39 = arith.addf %36, %38 : vector<256x32xf32>
    %cst_26 = arith.constant 5.000000e-01 : f32
    %40 = vector.broadcast %cst_26 : f32 to vector<256x32xf32>
    %41 = arith.mulf %40, %39 : vector<256x32xf32>
    %42 = math.tanh %41 : vector<256x32xf32>
    %cst_27 = arith.constant 5.000000e-01 : f32
    %43 = vector.broadcast %cst_27 : f32 to vector<256x32xf32>
    %44 = arith.mulf %43, %42 : vector<256x32xf32>
    %cst_28 = arith.constant 5.000000e-01 : f32
    %45 = vector.broadcast %cst_28 : f32 to vector<256x32xf32>
    %46 = arith.addf %44, %45 : vector<256x32xf32>
    %c0_29 = arith.constant 0 : index
    %c0_30 = arith.constant 0 : index
    %47 = vector.load %arg8[%c0_29, %c0_30] : memref<4x32xbf16, #tpu.memory_space<vmem>>, vector<4x32xbf16>
    %cst_31 = arith.constant dense<0.000000e+00> : vector<256x32xf32>
    %48 = tpu.matmul %15, %47, %cst_31 {dimension_numbers = #tpu.dot_dimension_numbers<[1], [0], [0], [1], [0, 0, 1, 1], [], []>} : vector<256x4xbf16>, vector<4x32xbf16>, vector<256x32xf32> -> vector<256x32xf32>
    %c0_32 = arith.constant 0 : index
    %c0_33 = arith.constant 0 : index
    %49 = vector.load %arg11[%c0_32, %c0_33] : memref<32x32xbf16, #tpu.memory_space<vmem>>, vector<32x32xbf16>
    %cst_34 = arith.constant dense<0.000000e+00> : vector<256x32xf32>
    %50 = tpu.matmul %16, %49, %cst_34 {dimension_numbers = #tpu.dot_dimension_numbers<[1], [0], [0], [1], [0, 0, 1, 1], [], []>} : vector<256x32xbf16>, vector<32x32xbf16>, vector<256x32xf32> -> vector<256x32xf32>
    %c0_35 = arith.constant 0 : index
    %c0_36 = arith.constant 0 : index
    %51 = vector.load %arg14[%c0_35, %c0_36] : memref<1x32xf32, #tpu.memory_space<vmem>>, vector<1x32xf32>
    %52 = vector.broadcast %51 : vector<1x32xf32> to vector<256x32xf32>
    %53 = arith.addf %48, %52 : vector<256x32xf32>
    %c0_37 = arith.constant 0 : index
    %c0_38 = arith.constant 0 : index
    %54 = vector.load %arg15[%c0_37, %c0_38] : memref<1x32xf32, #tpu.memory_space<vmem>>, vector<1x32xf32>
    %55 = vector.broadcast %54 : vector<1x32xf32> to vector<256x32xf32>
    %56 = arith.addf %50, %55 : vector<256x32xf32>
    %57 = arith.mulf %31, %56 : vector<256x32xf32>
    %58 = arith.addf %53, %57 : vector<256x32xf32>
    %59 = math.tanh %58 : vector<256x32xf32>
    %cst_39 = arith.constant 1.000000e+00 : f32
    %60 = vector.broadcast %cst_39 : f32 to vector<256x32xf32>
    %61 = arith.subf %60, %46 : vector<256x32xf32>
    %62 = arith.mulf %61, %59 : vector<256x32xf32>
    %63 = arith.mulf %46, %13 : vector<256x32xf32>
    %64 = arith.addf %62, %63 : vector<256x32xf32>
    %c0_40 = arith.constant 0 : index
    %c0_41 = arith.constant 0 : index
    %65 = vector.load %arg16[%c0_40, %c0_41] : memref<256x32xf32, #tpu.memory_space<vmem>>, vector<256x32xf32>
    tpu.vector_store %arg16[%c0_40, %c0_41], %64 {strides = array<i32>} : memref<256x32xf32, #tpu.memory_space<vmem>>, vector<256x32xf32>,
    return
  }
  func.func @transform_0(%arg0: i32) -> i32 {
    %c0_i32 = arith.constant 0 : i32
    %c0_i32_0 = arith.constant 0 : i32
    return %c0_i32 : i32
  }
  func.func @transform_1(%arg0: i32) -> (i32, i32) {
    %c0_i32 = arith.constant 0 : i32
    %c0_i32_0 = arith.constant 0 : i32
    return %arg0, %c0_i32 : i32, i32
  }
  func.func @transform_2(%arg0: i32) -> (i32, i32) {
    %c0_i32 = arith.constant 0 : i32
    %c0_i32_0 = arith.constant 0 : i32
    return %arg0, %c0_i32 : i32, i32
  }
  func.func @transform_3(%arg0: i32) -> (i32, i32) {
    %c0_i32 = arith.constant 0 : i32
    %c0_i32_0 = arith.constant 0 : i32
    return %arg0, %c0_i32 : i32, i32
  }
  func.func @transform_4(%arg0: i32) -> (i32, i32) {
    %c0_i32 = arith.constant 0 : i32
    %c0_i32_0 = arith.constant 0 : i32
    return %arg0, %c0_i32 : i32, i32
  }
  func.func @transform_5(%arg0: i32) -> (i32, i32) {
    %c0_i32 = arith.constant 0 : i32
    %c0_i32_0 = arith.constant 0 : i32
    %c0_i32_1 = arith.constant 0 : i32
    return %c0_i32, %c0_i32_0 : i32, i32
  }
  func.func @transform_6(%arg0: i32) -> (i32, i32) {
    %c0_i32 = arith.constant 0 : i32
    %c0_i32_0 = arith.constant 0 : i32
    %c0_i32_1 = arith.constant 0 : i32
    return %c0_i32, %c0_i32_0 : i32, i32
  }
  func.func @transform_7(%arg0: i32) -> (i32, i32) {
    %c0_i32 = arith.constant 0 : i32
    %c0_i32_0 = arith.constant 0 : i32
    %c0_i32_1 = arith.constant 0 : i32
    return %c0_i32, %c0_i32_0 : i32, i32
  }
  func.func @transform_8(%arg0: i32) -> (i32, i32) {
    %c0_i32 = arith.constant 0 : i32
    %c0_i32_0 = arith.constant 0 : i32
    %c0_i32_1 = arith.constant 0 : i32
    return %c0_i32, %c0_i32_0 : i32, i32
  }
  func.func @transform_9(%arg0: i32) -> (i32, i32) {
    %c0_i32 = arith.constant 0 : i32
    %c0_i32_0 = arith.constant 0 : i32
    %c0_i32_1 = arith.constant 0 : i32
    return %c0_i32, %c0_i32_0 : i32, i32
  }
  func.func @transform_10(%arg0: i32) -> (i32, i32) {
    %c0_i32 = arith.constant 0 : i32
    %c0_i32_0 = arith.constant 0 : i32
    %c0_i32_1 = arith.constant 0 : i32
    return %c0_i32, %c0_i32_0 : i32, i32
  }
  func.func @transform_11(%arg0: i32) -> (i32, i32) {
    %c0_i32 = arith.constant 0 : i32
    %c0_i32_0 = arith.constant 0 : i32
    %c0_i32_1 = arith.constant 0 : i32
    return %c0_i32, %c0_i32_0 : i32, i32
  }
  func.func @transform_12(%arg0: i32) -> (i32, i32) {
    %c0_i32 = arith.constant 0 : i32
    %c0_i32_0 = arith.constant 0 : i32
    %c0_i32_1 = arith.constant 0 : i32
    return %c0_i32, %c0_i32_0 : i32, i32
  }
  func.func @transform_13(%arg0: i32) -> (i32, i32) {
    %c0_i32 = arith.constant 0 : i32
    %c0_i32_0 = arith.constant 0 : i32
    %c0_i32_1 = arith.constant 0 : i32
    return %c0_i32, %c0_i32_0 : i32, i32
  }
  func.func @transform_14(%arg0: i32) -> (i32, i32) {
    %c0_i32 = arith.constant 0 : i32
    %c0_i32_0 = arith.constant 0 : i32
    %c0_i32_1 = arith.constant 0 : i32
    return %c0_i32, %c0_i32_0 : i32, i32
  }
  func.func @transform_15(%arg0: i32) -> (i32, i32) {
    %c0_i32 = arith.constant 0 : i32
    %c0_i32_0 = arith.constant 0 : i32
    return %arg0, %c0_i32 : i32, i32
  }
}

</mosaic_0001>

<bundles_post_ra>
// kernel: forward.1
= control target key start
LH: loop header
LB: loop body
LE: loop exit
PB: predicated region body
PF: predicated region fallthrough
CT: control target
= control target key end

     0   :  { %20 = vsyncpa [#allocation3], 0  ;;  %s3572_s18 = smov 0   ;;  %s5096_s0 = inlined_call_operand.vmem [shape: f32[3], index: 0, kind: input, shape index: {}]   ;;  %s5097_s1 = inlined_call_operand.vmem [shape: f32[512,4], index: 1, kind: input, shape index: {}]   ;;  %s5098_s2 = inlined_call_operand.vmem [shape: f32[512,32], index: 2, kind: input, shape index: {}]   ;;  %s5099_s3 = inlined_call_operand.vmem [shape: f32[512,32], index: 3, kind: input, shape index: {}]   ;;  %s5100_s4 = inlined_call_operand.vmem [shape: f32[512,32], index: 4, kind: input, shape index: {}]   ;;  %s5101_s5 = inlined_call_operand.vmem [shape: bf16[4,32], index: 5, kind: input, shape index: {}]   ;;  %s5102_s6 = inlined_call_operand.vmem [shape: bf16[4,32], index: 6, kind: input, shape index: {}]   ;;  %s5103_s7 = inlined_call_operand.vmem [shape: bf16[4,32], index: 7, kind: input, shape index: {}]   ;;  %s5104_s8 = inlined_call_operand.vmem [shape: bf16[32,32], index: 8, kind: input, shape index: {}]   ;;  %s5105_s9 = inlined_call_operand.vmem [shape: bf16[32,32], index: 9, kind: input, shape index: {}]   ;;  %s5106_s10 = inlined_call_operand.vmem [shape: bf16[32,32], index: 10, kind: input, shape index: {}]   ;;  %s5107_s11 = inlined_call_operand.vmem [shape: f32[1,32], index: 11, kind: input, shape index: {}]   ;;  %s5108_s12 = inlined_call_operand.vmem [shape: f32[1,32], index: 12, kind: input, shape index: {}]   ;;  %s5109_s13 = inlined_call_operand.vmem [shape: f32[1,32], index: 13, kind: input, shape index: {}]   ;;  %s5110_s14 = inlined_call_operand.vmem [shape: f32[1,32], index: 14, kind: input, shape index: {}]   ;;  %s5111_s15 = inlined_call_operand.vmem [shape: f32[512,32], index: 15, kind: output, shape index: {}]  }
   0x1 LB: > { %s2738_s19 = sadd.s32 4294967295, %s3489_s18   ;;  %p2740_p0 = scmp.ge.s32.totalorder %s3489_s18, 1  ;;  %s3489_s18 = sphi %s3572_s18, %s26_s18  }
   0x2   : > { %p392_p1 = scmp.lt.s32.totalorder %s3489_s18, 3  ;;  %s405_s22 = sshll.u32 %s5096_s0, 4  ;;  %s406_s22 = int_to_ptr.vmem [resolvable:$true] %s405_s22 }
   0x3   : > { %p3587_p3 = scmp.eq.s32.totalorder %s2738_s19, 0  ;;  %s3464_s25 = scalar_lea.vmem %s406_s22, 16 }
   0x4   : > { %p3583_p2 = pnand %p2740_p0, %p392_p1  ;;  %p3465_p6 = scmp.ne.s32.totalorder %s406_s22, %s3464_s25 }
   0x5   : > { %p3472_p10 = scmp.lt.s32.totalorder %s406_s22, %s406_s22  ;;  %p3473_p11 = scmp.lt.s32.totalorder %s3464_s25, %s3464_s25 }
   0x6   : > { %p3251_p4 = pneg %p3583_p2 }
   0x7   : > { %p3474_p12 = por %p3473_p11, %p3472_p10 }
   0x8   : > { %p3252_p5 = pnand %p3587_p3, %p3251_p4 }
   0xa   : > { %p3466_p7 = pneg %p3252_p5 }
   0xc   : > { %p3467_p8 = pnand %p3466_p7, %p3465_p6 }
   0xe   : > { %p3468_p9 = pneg %p3467_p8 }
  0x10   : > { %p3475_p13 = pnand %p3474_p12, %p3468_p9 }
  0x12   : > { %3478 = shalt.err (!%p3475_p13)
}
  0x13   : > { %s3491_s26 = smov [#allocation2]   ;;  %484 = sbr.rel (%p3583_p2) target bundleno = 498 (0x1f2), region = 80 }
  0x14   : > { %3254 = dma.vmem_to_smem (!%p3252_p5), %s406_s22, 16, %s3491_s26, [#allocation3]  }
  0x1a   : > { %3484 = dma.done.wait (%p3587_p3), [#allocation3], 16  }
  0x1b   : > { %3486 = vsyncadd (%p3587_p3), [#allocation3], 4294967280 }
  0x1c   : > { %490 = sfence }
  0x1d   : > { %v3266_v0 = vld [vmem:[%s5105_s9] sm:$0xff]   ;;  %s2745_s29 = sshll.u32 %s2738_s19, 5  ;;  %v3268_v2 = vld [vmem:[%s5105_s9 + $0x8] sm:$0xff]   ;;  %s579_s19 = sld [smem:[#allocation2]]  ;;  %vm1181_vm0 = vcmask 1041408   ;;  %vm922_vm1 = vcmask 261120  }
  0x1e   : > { %v3267_v1 = vld [vmem:[%s5104_s8] sm:$0xff]   ;;  %p549_p0 = scmp.lt.s32.totalorder %s2745_s29, 63  ;;  %3040 = vmatprep.subr.bf16.mxu1 %v3266_v0  ;;  %v3269_v3 = vld [vmem:[%s5104_s8 + $0x8] sm:$0xff]   ;;  %s2755_s23 = sld [smem:[#allocation2 + $0x1]]  ;;  %vm1132_vm2 = vcmask 31744  }
  0x1f   : > { %2970 = vmatprep.subr.bf16.mxu0 %v3267_v1  ;;  %3041 = vmatpush3.bf16.msra.mxu1 %v3266_v0  ;;  %s3615_s25 = sld [smem:[#allocation2 + $0x2]]  ;;  %v1513_v4 = vld [vmem:[%s5102_s6] sm:$0x3] }
  0x20   : > { %s5331_s29 = smov (!%p549_p0, %s2745_s29), 63  ;;  %2971 = vmatpush3.bf16.msra.mxu0 %v3267_v1  ;;  %3042 = vmatprep.subr.bf16.mxu1 %v3268_v2  ;;  %v3635_v5 = vld [vmem:[%s5101_s5] sm:$0x3]  ;;  %v3660_v17 = vsel %vm1181_vm0, %v1513_v4, 0 }
  0x21   : > { %2972 = vmatprep.subr.bf16.mxu0 %v3269_v3  ;;  %s3613_s24 = sshll.u32 %s5331_s29, 3 }
  0x22   : > { %s3624_s16 = scalar_lea.vmem %s5098_s2, %s3613_s24  ;;  %s3630_s29 = scalar_lea.vmem %s5099_s3, %s3613_s24 }
  0x23   : > { %3043 = vmatpush3.bf16.msra.mxu1 %v3268_v2  ;;  %s3641_s28 = scalar_lea.vmem %s5100_s4, %s3613_s24  ;;  %v582_v6 = vld [vmem:[%s3624_s16] sm:$0xff]  ;;  %v583_v7 = vld [vmem:[%s3624_s16 + $0x8] sm:$0xff]  ;;  %v584_v10 = vld [vmem:[%s3624_s16 + $0x10] sm:$0xff]  ;;  %v3653_v13 = vstv %s579_s19  ;;  %s4040_s20 = scalar_lea.vmem %s5097_s1, %s3613_s24 }
  0x24   : > { %2973 = vmatpush3.bf16.msra.mxu0 %v3269_v3  ;;  %v647_v8 = vld [vmem:[%s3630_s29] sm:$0xff]  ;;  %v648_v9 = vld [vmem:[%s3630_s29 + $0x8] sm:$0xff]  ;;  %3245 = vmatprep.subr.msk.bf16.mxu1 %vm1181_vm0, %v1513_v4  ;;  %v585_v11 = vld [vmem:[%s3624_s16 + $0x18] sm:$0xff]  ;;  %v3655_v14 = vstv %s2755_s23  ;;  %v615_v18 = vmul.f32 %v3653_v13, %v582_v6  ;;  %v616_v19 = vmul.f32 %v3653_v13, %v583_v7  ;;  %v617_v26 = vmul.f32 %v3653_v13, %v584_v10 }
  0x25   : > { %v649_v12 = vld [vmem:[%s3630_s29 + $0x10] sm:$0xff]  ;;  %3244 = vmatprep.subr.msk.bf16.mxu0 %vm1181_vm0, %v3635_v5  ;;  %v744_v15 = vld [vmem:[%s3641_s28] sm:$0xff]  ;;  %v745_v16 = vld [vmem:[%s3641_s28 + $0x8] sm:$0xff]  ;;  %v680_v20 = vmul.f32 %v3655_v14, %v647_v8  ;;  %v681_v21 = vmul.f32 %v3655_v14, %v648_v9  ;;  %v3670_v25 = vstv %s3615_s25  ;;  %v618_v27 = vmul.f32 %v3653_v13, %v585_v11 }
  0x26   : > { %v650_v22 = vld [vmem:[%s3630_s29 + $0x18] sm:$0xff]  ;;  %v746_v23 = vld [vmem:[%s3641_s28 + $0x10] sm:$0xff]  ;;  %v682_v28 = vmul.f32 %v3655_v14, %v649_v12  ;;  %v586_v29 = vld [vmem:[%s3624_s16 + $0x20] sm:$0xff]  ;;  %v777_v33 = vmul.f32 %v3670_v25, %v744_v15  ;;  %v778_v34 = vmul.f32 %v3670_v25, %v745_v16  ;;  %v1183_v3 = vsel %vm1181_vm0, %v3635_v5, 0 }
  0x27   : > { %v747_v24 = vld [vmem:[%s3641_s28 + $0x18] sm:$0xff]  ;;  %v587_v30 = vld [vmem:[%s3624_s16 + $0x28] sm:$0xff]  ;;  %v712_v31 = vadd.f32 %v680_v20, %v615_v18  ;;  %v713_v32 = vadd.f32 %v681_v21, %v616_v19  ;;  %v651_v35 = vld [vmem:[%s3630_s29 + $0x20] sm:$0xff]  ;;  %v683_v37 = vmul.f32 %v3655_v14, %v650_v22  ;;  %v779_v39 = vmul.f32 %v3670_v25, %v746_v23 }
  0x28   : > { %v652_v36 = vld [vmem:[%s3630_s29 + $0x28] sm:$0xff]  ;;  %v714_v38 = vadd.f32 %v682_v28, %v617_v26  ;;  %v780_v40 = vmul.f32 %v3670_v25, %v747_v24  ;;  %v748_v41 = vld [vmem:[%s3641_s28 + $0x20] sm:$0xff]  ;;  %v588_v43 = vld [vmem:[%s3624_s16 + $0x30] sm:$0xff]  ;;  %v619_v46 = vmul.f32 %v3653_v13, %v586_v29  ;;  %v620_v47 = vmul.f32 %v3653_v13, %v587_v30 }
  0x29   : > { %v749_v42 = vld [vmem:[%s3641_s28 + $0x28] sm:$0xff]  ;;  %v3687_v44 = vadd.f32 %v777_v33, %v712_v31  ;;  %v3689_v45 = vadd.f32 %v778_v34, %v713_v32  ;;  %v589_v48 = vld [vmem:[%s3624_s16 + $0x38] sm:$0xff]  ;;  %v715_v49 = vadd.f32 %v683_v37, %v618_v27  ;;  %v684_v51 = vmul.f32 %v3655_v14, %v651_v35  ;;  %v653_v53 = vld [vmem:[%s3630_s29 + $0x30] sm:$0xff] }
  0x2a   : > { %v3694_v50 = vadd.f32 %v779_v39, %v714_v38  ;;  %v685_v52 = vmul.f32 %v3655_v14, %v652_v36  ;;  %v654_v54 = vld [vmem:[%s3630_s29 + $0x38] sm:$0xff]  ;;  %v750_v55 = vld [vmem:[%s3641_s28 + $0x30] sm:$0xff]  ;;  %v781_v57 = vmul.f32 %v3670_v25, %v748_v41  ;;  %v782_v58 = vmul.f32 %v3670_v25, %v749_v42  ;;  %v590_v1 = vld [vmem:[%s3624_s16 + $0x40] sm:$0xff] }
  0x2b   : > { %v3703_v56 = vpack.c.bf16 %v3689_v45, %v3687_v44  ;;  %v621_v59 = vmul.f32 %v3653_v13, %v588_v43  ;;  %v751_v60 = vld [vmem:[%s3641_s28 + $0x38] sm:$0xff]  ;;  %v3709_v61 = vadd.f32 %v780_v40, %v715_v49  ;;  %v716_v62 = vadd.f32 %v684_v51, %v619_v46  ;;  %v591_v2 = vld [vmem:[%s3624_s16 + $0x48] sm:$0xff]  ;;  %v655_v8 = vld [vmem:[%s3630_s29 + $0x40] sm:$0xff] }
  0x2c   : > { %v717_v63 = vadd.f32 %v685_v52, %v620_v47  ;;  %v622_v0 = vmul.f32 %v3653_v13, %v589_v48  ;;  %v686_v4 = vmul.f32 %v3655_v14, %v653_v53  ;;  %v687_v6 = vmul.f32 %v3655_v14, %v654_v54  ;;  %v656_v9 = vld [vmem:[%s3630_s29 + $0x48] sm:$0xff]  ;;  %v752_v15 = vld [vmem:[%s3641_s28 + $0x40] sm:$0xff]  ;;  %v592_v27 = vld [vmem:[%s3624_s16 + $0x50] sm:$0xff] }
  0x2d   : > { %2974 = vmatprep.mubr.msk.bf16.mxu0 %vm922_vm1, %v3703_v56  ;;  %3044 = vmatprep.mubr.msk.bf16.mxu1 %vm922_vm1, %v3703_v56  ;;  %v783_v7 = vmul.f32 %v3670_v25, %v750_v55  ;;  %v3727_v10 = vpack.c.bf16 %v3709_v61, %v3694_v50  ;;  %v3729_v11 = vadd.f32 %v781_v57, %v716_v62  ;;  %v753_v21 = vld [vmem:[%s3641_s28 + $0x48] sm:$0xff]  ;;  %v3741_v22 = vld [vmem:[%s5106_s10] sm:$0xff]   ;;  %v593_v28 = vld [vmem:[%s3624_s16 + $0x58] sm:$0xff] }
  0x2e   : > { %v3731_v12 = vadd.f32 %v782_v58, %v717_v63  ;;  %v784_v5 = vmul.f32 %v3670_v25, %v751_v60  ;;  %v718_v16 = vadd.f32 %v686_v4, %v621_v59  ;;  %v719_v18 = vadd.f32 %v687_v6, %v622_v0  ;;  %v657_v29 = vld [vmem:[%s3630_s29 + $0x50] sm:$0xff]  ;;  %v658_v33 = vld [vmem:[%s3630_s29 + $0x58] sm:$0xff]  ;;  %v594_v38 = vld [vmem:[%s3624_s16 + $0x60] sm:$0xff] }
  0x2f   : > { %v623_v19 = vmul.f32 %v3653_v13, %v590_v1  ;;  %v624_v20 = vmul.f32 %v3653_v13, %v591_v2  ;;  %2975 = vmatmul.mubr.msk.bf16.vlgmr.msra.gmra.mrb[0].mxu0 %vm922_vm1, %v3727_v10  ;;  %3045 = vmatmul.mubr.msk.bf16.vlgmr.msra.gmra.mrb[0].mxu1 %vm922_vm1, %v3727_v10  ;;  %v688_v24 = vmul.f32 %v3655_v14, %v655_v8  ;;  %v754_v34 = vld [vmem:[%s3641_s28 + $0x50] sm:$0xff]  ;;  %v755_v37 = vld [vmem:[%s3641_s28 + $0x58] sm:$0xff]  ;;  %v595_v39 = vld [vmem:[%s3624_s16 + $0x68] sm:$0xff] }
  0x30   : > { %v3749_v23 = vpack.c.bf16 %v3731_v12, %v3729_v11  ;;  %v689_v26 = vmul.f32 %v3655_v14, %v656_v9  ;;  %3077 = vmatpush3.bf16.msra.mxu1 %v3660_v17  ;;  %3007 = vmatpush3.bf16.msra.mxu0 %v1183_v3  ;;  %v3757_v30 = vadd.f32 %v783_v7, %v718_v16  ;;  %v659_v46 = vld [vmem:[%s3630_s29 + $0x60] sm:$0xff]  ;;  %v660_v47 = vld [vmem:[%s3630_s29 + $0x68] sm:$0xff]  ;;  %v596_v55 = vld [vmem:[%s3624_s16 + $0x70] sm:$0xff] }
  0x31   : > { %v3759_v31 = vadd.f32 %v784_v5, %v719_v18  ;;  %v785_v32 = vmul.f32 %v3670_v25, %v752_v15  ;;  %v720_v35 = vadd.f32 %v688_v24, %v623_v19  ;;  %v786_v17 = vmul.f32 %v3670_v25, %v753_v21  ;;  %3144 = vmatprep.subr.bf16.mxu1 %v3741_v22  ;;  %v756_v53 = vld [vmem:[%s3641_s28 + $0x60] sm:$0xff]  ;;  %v757_v54 = vld [vmem:[%s3641_s28 + $0x68] sm:$0xff]  ;;  %v597_v2 = vld [vmem:[%s3624_s16 + $0x78] sm:$0xff] }
  0x32   : > { %2978 = vmatprep.mubr.msk.bf16.mxu0 %vm922_vm1, %v3749_v23  ;;  %3048 = vmatprep.mubr.msk.bf16.mxu1 %vm922_vm1, %v3749_v23  ;;  %v721_v36 = vadd.f32 %v689_v26, %v624_v20  ;;  %v625_v41 = vmul.f32 %v3653_v13, %v592_v27  ;;  %v626_v42 = vmul.f32 %v3653_v13, %v593_v28  ;;  %v661_v3 = vld [vmem:[%s3630_s29 + $0x70] sm:$0xff]  ;;  %v662_v4 = vld [vmem:[%s3630_s29 + $0x78] sm:$0xff]  ;;  %v598_v20 = vld [vmem:[%s3624_s16 + $0x80] sm:$0xff] }
  0x33   : > { %v3774_v40 = vpack.c.bf16 %v3759_v31, %v3757_v30  ;;  %v690_v43 = vmul.f32 %v3655_v14, %v657_v29  ;;  %v3782_v48 = vadd.f32 %v785_v32, %v720_v35  ;;  %v691_v51 = vmul.f32 %v3655_v14, %v658_v33  ;;  %v758_v5 = vld [vmem:[%s3641_s28 + $0x70] sm:$0xff]  ;;  %v759_v19 = vld [vmem:[%s3641_s28 + $0x78] sm:$0xff]  ;;  %v599_v27 = vld [vmem:[%s3624_s16 + $0x88] sm:$0xff] }
  0x34   : > { %v3784_v49 = vadd.f32 %v786_v17, %v721_v36  ;;  %v787_v52 = vmul.f32 %v3670_v25, %v754_v34  ;;  %v788_v58 = vmul.f32 %v3670_v25, %v755_v37  ;;  %v627_v59 = vmul.f32 %v3653_v13, %v594_v38  ;;  %v663_v28 = vld [vmem:[%s3630_s29 + $0x80] sm:$0xff]  ;;  %v664_v29 = vld [vmem:[%s3630_s29 + $0x88] sm:$0xff] }
  0x35   : > { %v722_v57 = vadd.f32 %v690_v43, %v625_v41  ;;  %v628_v60 = vmul.f32 %v3653_v13, %v595_v39  ;;  %v723_v63 = vadd.f32 %v691_v51, %v626_v42  ;;  %v692_v0 = vmul.f32 %v3655_v14, %v659_v46  ;;  %v760_v35 = vld [vmem:[%s3641_s28 + $0x80] sm:$0xff]  ;;  %v761_v36 = vld [vmem:[%s3641_s28 + $0x88] sm:$0xff]  ;;  %v600_v41 = vld [vmem:[%s3624_s16 + $0x90] sm:$0xff] }
  0x36   : > { %v3796_v62 = vpack.c.bf16 %v3784_v49, %v3782_v48  ;;  %v693_v1 = vmul.f32 %v3655_v14, %v660_v47  ;;  %v789_v7 = vmul.f32 %v3670_v25, %v756_v53  ;;  %v790_v8 = vmul.f32 %v3670_v25, %v757_v54  ;;  %v601_v51 = vld [vmem:[%s3624_s16 + $0x98] sm:$0xff] }
  0x37   : > { %v3803_v6 = vadd.f32 %v787_v52, %v722_v57  ;;  %v629_v9 = vmul.f32 %v3653_v13, %v596_v55  ;;  %2979 = vmatmul.mubr.msk.bf16.gmra.mrb[4].mxu0 %vm922_vm1, %v3774_v40  ;;  %3049 = vmatmul.mubr.msk.bf16.gmra.mrb[4].mxu1 %vm922_vm1, %v3774_v40  ;;  %v3813_v15 = vadd.f32 %v788_v58, %v723_v63  ;;  %v665_v52 = vld [vmem:[%s3630_s29 + $0x90] sm:$0xff]  ;;  %v666_v53 = vld [vmem:[%s3630_s29 + $0x98] sm:$0xff]  ;;  %v602_v63 = vld [vmem:[%s3624_s16 + $0xa0] sm:$0xff] }
  0x38   : > { %v724_v16 = vadd.f32 %v692_v0, %v627_v59  ;;  %v725_v18 = vadd.f32 %v693_v1, %v628_v60  ;;  %2982 = vmatprep.mubr.msk.bf16.mxu0 %vm922_vm1, %v3796_v62  ;;  %3052 = vmatprep.mubr.msk.bf16.mxu1 %vm922_vm1, %v3796_v62  ;;  %v630_v21 = vmul.f32 %v3653_v13, %v597_v2 }
  0x39   : > { %v694_v24 = vmul.f32 %v3655_v14, %v661_v3  ;;  %v695_v26 = vmul.f32 %v3655_v14, %v662_v4  ;;  %v791_v34 = vmul.f32 %v3670_v25, %v758_v5  ;;  %v3836_v17 = vpack.c.bf16 %v3813_v15, %v3803_v6  ;;  %v603_v4 = vld [vmem:[%s3624_s16 + $0xa8] sm:$0xff] }
  0x3a   : > { %v3827_v32 = vadd.f32 %v789_v7, %v724_v16  ;;  %v3829_v33 = vadd.f32 %v790_v8, %v725_v18  ;;  %v631_v39 = vmul.f32 %v3653_v13, %v598_v20  ;;  %v792_v42 = vmul.f32 %v3670_v25, %v759_v19  ;;  %v667_v7 = vld [vmem:[%s3630_s29 + $0xa0] sm:$0xff]  ;;  %v668_v8 = vld [vmem:[%s3630_s29 + $0xa8] sm:$0xff]  ;;  %v762_v18 = vld [vmem:[%s3641_s28 + $0x90] sm:$0xff] }
  0x3b   : > { %v726_v37 = vadd.f32 %v694_v24, %v629_v9  ;;  %v727_v38 = vadd.f32 %v695_v26, %v630_v21  ;;  %v632_v43 = vmul.f32 %v3653_v13, %v599_v27  ;;  %v696_v46 = vmul.f32 %v3655_v14, %v663_v28  ;;  %v763_v19 = vld [vmem:[%s3641_s28 + $0x98] sm:$0xff]  ;;  %v764_v21 = vld [vmem:[%s3641_s28 + $0xa0] sm:$0xff]  ;;  %v765_v24 = vld [vmem:[%s3641_s28 + $0xa8] sm:$0xff] }
  0x3c   : > { %v697_v47 = vmul.f32 %v3655_v14, %v664_v29  ;;  %v3849_v54 = vpack.c.bf16 %v3829_v33, %v3827_v32  ;;  %v793_v55 = vmul.f32 %v3670_v25, %v760_v35  ;;  %v794_v57 = vmul.f32 %v3670_v25, %v761_v36  ;;  %v604_v29 = vld [vmem:[%s3624_s16 + $0xb0] sm:$0xff] }
  0x3d   : > { %v3853_v58 = vadd.f32 %v791_v34, %v726_v37  ;;  %v728_v59 = vadd.f32 %v696_v46, %v631_v39  ;;  %v633_v0 = vmul.f32 %v3653_v13, %v600_v41  ;;  %v634_v1 = vmul.f32 %v3653_v13, %v601_v51  ;;  %v605_v34 = vld [vmem:[%s3624_s16 + $0xb8] sm:$0xff]  ;;  %v669_v39 = vld [vmem:[%s3630_s29 + $0xb0] sm:$0xff] }
  0x3e   : > { %v729_v60 = vadd.f32 %v697_v47, %v632_v43  ;;  %v698_v2 = vmul.f32 %v3655_v14, %v665_v52  ;;  %v699_v3 = vmul.f32 %v3655_v14, %v666_v53  ;;  %v3867_v9 = vadd.f32 %v792_v42, %v727_v38  ;;  %v670_v41 = vld [vmem:[%s3630_s29 + $0xb8] sm:$0xff]  ;;  %v3894_v42 = vld [vmem:[%s5103_s7] sm:$0x3] }
  0x3f   : > { %2983 = vmatmul.mubr.msk.bf16.gmra.mrb[8].mxu0 %vm922_vm1, %v3836_v17  ;;  %3053 = vmatmul.mubr.msk.bf16.gmra.mrb[8].mxu1 %vm922_vm1, %v3836_v17  ;;  %v3869_v5 = vadd.f32 %v793_v55, %v728_v59  ;;  %v635_v20 = vmul.f32 %v3653_v13, %v602_v63  ;;  %v636_v26 = vmul.f32 %v3653_v13, %v603_v4  ;;  %v606_v47 = vld [vmem:[%s3624_s16 + $0xc0] sm:$0xff] }
  0x40   : > { %v3871_v16 = vadd.f32 %v794_v57, %v729_v60  ;;  %2986 = vmatprep.mubr.msk.bf16.mxu0 %vm922_vm1, %v3849_v54  ;;  %3056 = vmatprep.mubr.msk.bf16.mxu1 %vm922_vm1, %v3849_v54  ;;  %v700_v27 = vmul.f32 %v3655_v14, %v667_v7  ;;  %v701_v28 = vmul.f32 %v3655_v14, %v668_v8  ;;  %v607_v57 = vld [vmem:[%s3624_s16 + $0xc8] sm:$0xff]  ;;  %v671_v59 = vld [vmem:[%s3630_s29 + $0xc0] sm:$0xff]  ;;  %v766_v7 = vld [vmem:[%s3641_s28 + $0xb0] sm:$0xff] }
  0x41   : > { %v730_v35 = vadd.f32 %v698_v2, %v633_v0  ;;  %v731_v36 = vadd.f32 %v699_v3, %v634_v1  ;;  %v795_v37 = vmul.f32 %v3670_v25, %v762_v18  ;;  %v796_v38 = vmul.f32 %v3670_v25, %v763_v19  ;;  %3246 = vmatprep.subr.msk.bf16.mxu0 %vm1181_vm0, %v3894_v42  ;;  %v672_v60 = vld [vmem:[%s3630_s29 + $0xc8] sm:$0xff]  ;;  %v767_v8 = vld [vmem:[%s3641_s28 + $0xb8] sm:$0xff] }
  0x42   : > { %v3898_v43 = vpack.c.bf16 %v3867_v9, %v3853_v58  ;;  %v3902_v46 = vpack.c.bf16 %v3871_v16, %v3869_v5  ;;  %v732_v51 = vadd.f32 %v700_v27, %v635_v20  ;;  %v733_v52 = vadd.f32 %v701_v28, %v636_v26  ;;  %v768_v27 = vld [vmem:[%s3641_s28 + $0xc0] sm:$0xff]  ;;  %v769_v28 = vld [vmem:[%s3641_s28 + $0xc8] sm:$0xff] }
  0x43   : > { %v797_v53 = vmul.f32 %v3670_v25, %v764_v21  ;;  %v798_v55 = vmul.f32 %v3670_v25, %v765_v24  ;;  %v637_v63 = vmul.f32 %v3653_v13, %v604_v29  ;;  %v638_v0 = vmul.f32 %v3653_v13, %v605_v34 }
  0x44   : > { %v702_v1 = vmul.f32 %v3655_v14, %v669_v39  ;;  %v703_v2 = vmul.f32 %v3655_v14, %v670_v41  ;;  %v3916_v3 = vadd.f32 %v795_v37, %v730_v35  ;;  %v3918_v4 = vadd.f32 %v796_v38, %v731_v36  ;;  %v608_v38 = vld [vmem:[%s3624_s16 + $0xd0] sm:$0xff] }
  0x45   : > { %v639_v18 = vmul.f32 %v3653_v13, %v606_v47  ;;  %v640_v19 = vmul.f32 %v3653_v13, %v607_v57  ;;  %v704_v20 = vmul.f32 %v3655_v14, %v671_v59  ;;  %v705_v21 = vmul.f32 %v3655_v14, %v672_v60  ;;  %v610_v59 = vld [vmem:[%s3624_s16 + $0xe0] sm:$0xff] }
  0x46   : > { %v3934_v24 = vadd.f32 %v797_v53, %v732_v51  ;;  %v3936_v26 = vadd.f32 %v798_v55, %v733_v52  ;;  %v734_v29 = vadd.f32 %v702_v1, %v637_v63  ;;  %v735_v34 = vadd.f32 %v703_v2, %v638_v0  ;;  %v609_v52 = vld [vmem:[%s3624_s16 + $0xd8] sm:$0xff]  ;;  %v673_v53 = vld [vmem:[%s3630_s29 + $0xd0] sm:$0xff]  ;;  %v611_v0 = vld [vmem:[%s3624_s16 + $0xe8] sm:$0xff] }
  0x47   : > { %2987 = vmatmul.mubr.msk.bf16.gmra.mrb[12].mxu0 %vm922_vm1, %v3898_v43  ;;  %3057 = vmatmul.mubr.msk.bf16.gmra.mrb[12].mxu1 %vm922_vm1, %v3898_v43  ;;  %v799_v35 = vmul.f32 %v3670_v25, %v766_v7  ;;  %v800_v36 = vmul.f32 %v3670_v25, %v767_v8  ;;  %v3944_v37 = vpack.c.bf16 %v3918_v4, %v3916_v3  ;;  %v674_v55 = vld [vmem:[%s3630_s29 + $0xd8] sm:$0xff]  ;;  %v675_v1 = vld [vmem:[%s3630_s29 + $0xe0] sm:$0xff]  ;;  %v676_v2 = vld [vmem:[%s3630_s29 + $0xe8] sm:$0xff] }
  0x48   : > { %2990 = vmatprep.mubr.msk.bf16.mxu0 %vm922_vm1, %v3902_v46  ;;  %3060 = vmatprep.mubr.msk.bf16.mxu1 %vm922_vm1, %v3902_v46  ;;  %5149 = vst [vmem:[#allocation5_spill] sm:$0xff] %v3936_v26  ;;  %v736_v39 = vadd.f32 %v704_v20, %v639_v18  ;;  %v737_v41 = vadd.f32 %v705_v21, %v640_v19 }
  0x49   : > { %v801_v47 = vmul.f32 %v3670_v25, %v768_v27  ;;  %v802_v51 = vmul.f32 %v3670_v25, %v769_v28  ;;  %v3954_v57 = vpack.c.bf16 %v3936_v26, %v3934_v24  ;;  %v3957_v60 = vadd.f32 %v799_v35, %v734_v29  ;;  %v770_v27 = vld [vmem:[%s3641_s28 + $0xd0] sm:$0xff]  ;;  %v771_v28 = vld [vmem:[%s3641_s28 + $0xd8] sm:$0xff] }
  0x4a   : > { %v3959_v63 = vadd.f32 %v800_v36, %v735_v34  ;;  %v641_v7 = vmul.f32 %v3653_v13, %v608_v38  ;;  %v642_v8 = vmul.f32 %v3653_v13, %v609_v52  ;;  %v706_v18 = vmul.f32 %v3655_v14, %v673_v53  ;;  %v772_v38 = vld [vmem:[%s3641_s28 + $0xe0] sm:$0xff] }
  0x4b   : > { %v707_v19 = vmul.f32 %v3655_v14, %v674_v55  ;;  %v3972_v20 = vadd.f32 %v801_v47, %v736_v39  ;;  %v3974_v21 = vadd.f32 %v802_v51, %v737_v41  ;;  %v643_v29 = vmul.f32 %v3653_v13, %v610_v59  ;;  %v773_v39 = vld [vmem:[%s3641_s28 + $0xe8] sm:$0xff]  ;;  %v612_v59 = vld [vmem:[%s3624_s16 + $0xf0] sm:$0xff] }
  0x4c   : > { %v644_v34 = vmul.f32 %v3653_v13, %v611_v0  ;;  %v708_v35 = vmul.f32 %v3655_v14, %v675_v1  ;;  %v709_v36 = vmul.f32 %v3655_v14, %v676_v2  ;;  %v738_v41 = vadd.f32 %v706_v18, %v641_v7  ;;  %v677_v18 = vld [vmem:[%s3630_s29 + $0xf0] sm:$0xff] }
  0x4d   : > { %5150 = vst [vmem:[#allocation6_spill] sm:$0xff] %v3972_v20  ;;  %5151 = vst [vmem:[#allocation7_spill] sm:$0xff] %v3974_v21  ;;  %v739_v47 = vadd.f32 %v707_v19, %v642_v8  ;;  %v803_v51 = vmul.f32 %v3670_v25, %v770_v27  ;;  %v804_v52 = vmul.f32 %v3670_v25, %v771_v28  ;;  %v613_v8 = vld [vmem:[%s3624_s16 + $0xf8] sm:$0xff] }
  0x4e   : > { %v3992_v53 = vpack.c.bf16 %v3959_v63, %v3957_v60  ;;  %v3996_v55 = vpack.c.bf16 %v3974_v21, %v3972_v20  ;;  %v740_v0 = vadd.f32 %v708_v35, %v643_v29  ;;  %v741_v1 = vadd.f32 %v709_v36, %v644_v34  ;;  %v678_v19 = vld [vmem:[%s3630_s29 + $0xf8] sm:$0xff] }
  0x4f   : > { %2991 = vmatmul.mubr.msk.bf16.gmra.mrb[16].mxu0 %vm922_vm1, %v3944_v37  ;;  %3061 = vmatmul.mubr.msk.bf16.gmra.mrb[16].mxu1 %vm922_vm1, %v3944_v37  ;;  %v805_v2 = vmul.f32 %v3670_v25, %v772_v38  ;;  %v806_v7 = vmul.f32 %v3670_v25, %v773_v39  ;;  %v4004_v27 = vadd.f32 %v803_v51, %v738_v41  ;;  %v774_v39 = vld [vmem:[%s3641_s28 + $0xf0] sm:$0xff]  ;;  %v775_v41 = vld [vmem:[%s3641_s28 + $0xf8] sm:$0xff] }
  0x50   : > { %2994 = vmatprep.mubr.msk.bf16.mxu0 %vm922_vm1, %v3954_v57  ;;  %3064 = vmatprep.mubr.msk.bf16.mxu1 %vm922_vm1, %v3954_v57  ;;  %v4006_v28 = vadd.f32 %v804_v52, %v739_v47  ;;  %v645_v26 = vmul.f32 %v3653_v13, %v612_v59  ;;  %v646_v29 = vmul.f32 %v3653_v13, %v613_v8  ;;  %v843_v8 = vld [vmem:[%s4040_s20 + $0x10] sm:$0xff] }
  0x51   : > { %v710_v34 = vmul.f32 %v3655_v14, %v677_v18  ;;  %v711_v35 = vmul.f32 %v3655_v14, %v678_v19  ;;  %v4020_v36 = vadd.f32 %v805_v2, %v740_v0  ;;  %v4022_v38 = vadd.f32 %v806_v7, %v741_v1  ;;  %v841_v0 = vld [vmem:[%s4040_s20] sm:$0xff]  ;;  %v842_v1 = vld [vmem:[%s4040_s20 + $0x8] sm:$0xff]  ;;  %v844_v18 = vld [vmem:[%s4040_s20 + $0x18] sm:$0xff] }
  0x52   : > { %5152 = vst [vmem:[#allocation8_spill] sm:$0xff] %v4006_v28  ;;  %v4028_v47 = vpack.c.bf16 %v4006_v28, %v4004_v27  ;;  %v807_v14 = vmul.f32 %v3670_v25, %v774_v39  ;;  %v808_v52 = vmul.f32 %v3670_v25, %v775_v41  ;;  %v4060_v7 = vpack.c.bf16 %v842_v1, %v841_v0  ;;  %v845_v19 = vld [vmem:[%s4040_s20 + $0x20] sm:$0xff]  ;;  %v3271_v41 = vld [vmem:[%s5106_s10 + $0x8] sm:$0xff]   ;;  %v852_v1 = vld [vmem:[%s4040_s20 + $0x58] sm:$0xff] }
  0x53   : > { %5153 = vst [vmem:[#allocation9_spill] sm:$0xff] %v4020_v36  ;;  %5154 = vst [vmem:[#allocation10_spill] sm:$0xff] %v4022_v38  ;;  %v742_v13 = vadd.f32 %v710_v34, %v645_v26  ;;  %v743_v51 = vadd.f32 %v711_v35, %v646_v29  ;;  %v4034_v59 = vpack.c.bf16 %v4022_v38, %v4020_v36  ;;  %v846_v29 = vld [vmem:[%s4040_s20 + $0x28] sm:$0xff]  ;;  %v2035_v35 = vsel %vm1181_vm0, %v3894_v42, 0  ;;  %v848_v42 = vld [vmem:[%s4040_s20 + $0x38] sm:$0xff] }
  0x54   : > { %v4074_v34 = vpack.c.bf16 %v844_v18, %v843_v8  ;;  %v4078_v39 = vpack.c.bf16 %v846_v29, %v845_v19  ;;  %v853_v8 = vld [vmem:[%s4040_s20 + $0x60] sm:$0xff]  ;;  %v854_v18 = vld [vmem:[%s4040_s20 + $0x68] sm:$0xff] }
  0x55   : > { %v4046_v25 = vadd.f32 %v807_v14, %v742_v13  ;;  %v4048_v26 = vadd.f32 %v808_v52, %v743_v51  ;;  %v847_v13 = vld [vmem:[%s4040_s20 + $0x30] sm:$0xff]  ;;  %v849_v51 = vld [vmem:[%s4040_s20 + $0x40] sm:$0xff]  ;;  %v850_v14 = vld [vmem:[%s4040_s20 + $0x48] sm:$0xff]  ;;  %v879_v29 = vpack.c.bf16 %v854_v18, %v853_v8 }
  0x56   : > { %v4096_v52 = vpack.c.bf16 %v848_v42, %v847_v13  ;;  %v4098_v0 = vpack.c.bf16 %v850_v14, %v849_v51  ;;  %v857_v13 = vld [vmem:[%s4040_s20 + $0x80] sm:$0xff]  ;;  %v858_v42 = vld [vmem:[%s4040_s20 + $0x88] sm:$0xff] }
  0x57   : > { %2995 = vmatmul.mubr.msk.bf16.gmra.mrb[20].mxu0 %vm922_vm1, %v3992_v53  ;;  %3065 = vmatmul.mubr.msk.bf16.gmra.mrb[20].mxu1 %vm922_vm1, %v3992_v53  ;;  %5155 = vst [vmem:[#allocation11_spill] sm:$0xff] %v4046_v25  ;;  %5156 = vst [vmem:[#allocation12_spill] sm:$0xff] %v4048_v26  ;;  %v4058_v2 = vpack.c.bf16 %v4048_v26, %v4046_v25  ;;  %v881_v14 = vpack.c.bf16 %v858_v42, %v857_v13  ;;  %v861_v8 = vld [vmem:[%s4040_s20 + $0xa0] sm:$0xff]  ;;  %v862_v18 = vld [vmem:[%s4040_s20 + $0xa8] sm:$0xff] }
  0x58   : > { %2998 = vmatprep.mubr.msk.bf16.mxu0 %vm922_vm1, %v3996_v55  ;;  %3068 = vmatprep.mubr.msk.bf16.mxu1 %vm922_vm1, %v3996_v55  ;;  %v864_v13 = vld [vmem:[%s4040_s20 + $0xb8] sm:$0xff]  ;;  %v865_v42 = vld [vmem:[%s4040_s20 + $0xc0] sm:$0xff]  ;;  %v866_v26 = vld [vmem:[%s4040_s20 + $0xc8] sm:$0xff] }
  0x59   : > { %v870_v25 = vld [vmem:[%s4040_s20 + $0xe8] sm:$0xff] }
  0x5f   : > { %2999 = vmatmul.mubr.msk.bf16.gmra.mrb[24].mxu0 %vm922_vm1, %v4028_v47  ;;  %3069 = vmatmul.mubr.msk.bf16.gmra.mrb[24].mxu1 %vm922_vm1, %v4028_v47 }
  0x60   : > { %3002 = vmatprep.mubr.msk.bf16.mxu0 %vm922_vm1, %v4034_v59  ;;  %3072 = vmatprep.mubr.msk.bf16.mxu1 %vm922_vm1, %v4034_v59 }
  0x67   : > { %3003 = vmatmul.mubr.msk.bf16.gmra.mrb[28].mxu0 %vm922_vm1, %v4058_v2  ;;  %3073 = vmatmul.mubr.msk.bf16.gmra.mrb[28].mxu1 %vm922_vm1, %v4058_v2 }
  0x68   : > { %3008 = vmatprep.mubr.msk.bf16.mxu0 %vm1132_vm2, %v4060_v7  ;;  %3078 = vmatprep.mubr.msk.bf16.mxu1 %vm1132_vm2, %v4060_v7 }
  0x6f   : > { %3009 = vmatmul.mubr.msk.bf16.vlgmr.msra.gmra.mrb[0].mxu0 %vm1132_vm2, %v4074_v34  ;;  %3079 = vmatmul.mubr.msk.bf16.vlgmr.msra.gmra.mrb[0].mxu1 %vm1132_vm2, %v4074_v34 }
  0x70   : > { %3145 = vmatpush3.bf16.msra.mxu1 %v3741_v22  ;;  %3111 = vmatpush3.bf16.msra.mxu0 %v2035_v35  ;;  %v851_v22 = vld [vmem:[%s4040_s20 + $0x50] sm:$0xff] }
  0x71   : > { %3012 = vmatprep.mubr.msk.bf16.mxu0 %vm1132_vm2, %v4078_v39  ;;  %3082 = vmatprep.mubr.msk.bf16.mxu1 %vm1132_vm2, %v4078_v39  ;;  %v878_v19 = vpack.c.bf16 %v852_v1, %v851_v22  ;;  %v855_v35 = vld [vmem:[%s4040_s20 + $0x70] sm:$0xff]  ;;  %v860_v1 = vld [vmem:[%s4040_s20 + $0x98] sm:$0xff] }
  0x72   : > { %3146 = vmatprep.subr.bf16.mxu1 %v3271_v41  ;;  %v859_v22 = vld [vmem:[%s4040_s20 + $0x90] sm:$0xff] }
  0x73   : > { %v882_v38 = vpack.c.bf16 %v860_v1, %v859_v22  ;;  %v885_v22 = vpack.c.bf16 %v866_v26, %v865_v42  ;;  %v867_v1 = vld [vmem:[%s4040_s20 + $0xd0] sm:$0xff] }
  0x74   : > { %3147 = vmatpush3.bf16.msra.mxu1 %v3271_v41  ;;  %v856_v41 = vld [vmem:[%s4040_s20 + $0x78] sm:$0xff]  ;;  %v871_v26 = vld [vmem:[%s4040_s20 + $0xf0] sm:$0xff] }
  0x75   : > { %v880_v51 = vpack.c.bf16 %v856_v41, %v855_v35  ;;  %v883_v35 = vpack.c.bf16 %v862_v18, %v861_v8  ;;  %v863_v41 = vld [vmem:[%s4040_s20 + $0xb0] sm:$0xff]  ;;  %v868_v8 = vld [vmem:[%s4040_s20 + $0xd8] sm:$0xff]  ;;  %v869_v18 = vld [vmem:[%s4040_s20 + $0xe0] sm:$0xff] }
  0x76   : > { %v884_v36 = vpack.c.bf16 %v864_v13, %v863_v41  ;;  %v886_v21 = vpack.c.bf16 %v868_v8, %v867_v1  ;;  %v887_v28 = vpack.c.bf16 %v870_v25, %v869_v18  ;;  %v872_v41 = vld [vmem:[%s4040_s20 + $0xf8] sm:$0xff]  ;;  %s4782_s20 = scalar_lea.vmem %s5111_s15, %s3613_s24 }
  0x77   : > { %3013 = vmatmul.mubr.msk.bf16.gmra.mrb[4].mxu0 %vm1132_vm2, %v4096_v52  ;;  %3083 = vmatmul.mubr.msk.bf16.gmra.mrb[4].mxu1 %vm1132_vm2, %v4096_v52  ;;  %v888_v13 = vpack.c.bf16 %v872_v41, %v871_v26 }
  0x78   : > { %3016 = vmatprep.mubr.msk.bf16.mxu0 %vm1132_vm2, %v4098_v0  ;;  %3086 = vmatprep.mubr.msk.bf16.mxu1 %vm1132_vm2, %v4098_v0 }
  0x7f   : > { %3017 = vmatmul.mubr.msk.bf16.gmra.mrb[8].mxu0 %vm1132_vm2, %v878_v19  ;;  %3087 = vmatmul.mubr.msk.bf16.gmra.mrb[8].mxu1 %vm1132_vm2, %v878_v19 }
  0x80   : > { %3020 = vmatprep.mubr.msk.bf16.mxu0 %vm1132_vm2, %v879_v29  ;;  %3090 = vmatprep.mubr.msk.bf16.mxu1 %vm1132_vm2, %v879_v29 }
  0x87   : > { %3021 = vmatmul.mubr.msk.bf16.gmra.mrb[12].mxu0 %vm1132_vm2, %v880_v51  ;;  %3091 = vmatmul.mubr.msk.bf16.gmra.mrb[12].mxu1 %vm1132_vm2, %v880_v51 }
  0x88   : > { %3024 = vmatprep.mubr.msk.bf16.mxu0 %vm1132_vm2, %v881_v14  ;;  %3094 = vmatprep.mubr.msk.bf16.mxu1 %vm1132_vm2, %v881_v14 }
  0x8f   : > { %3025 = vmatmul.mubr.msk.bf16.gmra.mrb[16].mxu0 %vm1132_vm2, %v882_v38  ;;  %3095 = vmatmul.mubr.msk.bf16.gmra.mrb[16].mxu1 %vm1132_vm2, %v882_v38 }
  0x90   : > { %3028 = vmatprep.mubr.msk.bf16.mxu0 %vm1132_vm2, %v883_v35  ;;  %3098 = vmatprep.mubr.msk.bf16.mxu1 %vm1132_vm2, %v883_v35 }
  0x97   : > { %3029 = vmatmul.mubr.msk.bf16.gmra.mrb[20].mxu0 %vm1132_vm2, %v884_v36  ;;  %3099 = vmatmul.mubr.msk.bf16.gmra.mrb[20].mxu1 %vm1132_vm2, %v884_v36 }
  0x98   : > { %3032 = vmatprep.mubr.msk.bf16.mxu0 %vm1132_vm2, %v885_v22  ;;  %3102 = vmatprep.mubr.msk.bf16.mxu1 %vm1132_vm2, %v885_v22 }
  0x9f   : > { %3033 = vmatmul.mubr.msk.bf16.gmra.mrb[24].mxu0 %vm1132_vm2, %v886_v21  ;;  %3103 = vmatmul.mubr.msk.bf16.gmra.mrb[24].mxu1 %vm1132_vm2, %v886_v21 }
  0xa0   : > { %3036 = vmatprep.mubr.msk.bf16.mxu0 %vm1132_vm2, %v887_v28  ;;  %3106 = vmatprep.mubr.msk.bf16.mxu1 %vm1132_vm2, %v887_v28 }
  0xa7   : > { %3037 = vmatmul.mubr.msk.bf16.gmra.mrb[28].mxu0 %vm1132_vm2, %v888_v13  ;;  %3107 = vmatmul.mubr.msk.bf16.gmra.mrb[28].mxu1 %vm1132_vm2, %v888_v13 }
  0xa8   : > { %3112 = vmatprep.mubr.msk.bf16.mxu0 %vm1132_vm2, %v4060_v7  ;;  %3148 = vmatprep.mubr.msk.bf16.mxu1 %vm922_vm1, %v3703_v56  ;;  %v4208_v56 = vld [vmem:[%s5107_s11] ss:$0 sm:$0xff] }
  0xaf   : > { %3113 = vmatmul.mubr.msk.bf16.vlgmr.msra.gmra.mrb[32].mxu0 %vm1132_vm2, %v4074_v34  ;;  %3149 = vmatmul.mubr.msk.bf16.vlgmr.msra.gmra.mrb[32].mxu1 %vm922_vm1, %v3727_v10  ;;  %v4213_v10 = vld [vmem:[%s5108_s12] ss:$0 sm:$0xff] }
  0xb0   : > { %3116 = vmatprep.mubr.msk.bf16.mxu0 %vm1132_vm2, %v4078_v39  ;;  %3152 = vmatprep.mubr.msk.bf16.mxu1 %vm922_vm1, %v3749_v23 }
  0xb7   : > { %3117 = vmatmul.mubr.msk.bf16.gmra.mrb[36].mxu0 %vm1132_vm2, %v4096_v52  ;;  %3153 = vmatmul.mubr.msk.bf16.gmra.mrb[36].mxu1 %vm922_vm1, %v3774_v40 }
  0xb8   : > { %3120 = vmatprep.mubr.msk.bf16.mxu0 %vm1132_vm2, %v4098_v0  ;;  %3156 = vmatprep.mubr.msk.bf16.mxu1 %vm922_vm1, %v3796_v62 }
  0xbf   : > { %3121 = vmatmul.mubr.msk.bf16.gmra.mrb[40].mxu0 %vm1132_vm2, %v878_v19  ;;  %3157 = vmatmul.mubr.msk.bf16.gmra.mrb[40].mxu1 %vm922_vm1, %v3836_v17 }
  0xc0   : > { %3124 = vmatprep.mubr.msk.bf16.mxu0 %vm1132_vm2, %v879_v29  ;;  %3160 = vmatprep.mubr.msk.bf16.mxu1 %vm922_vm1, %v3849_v54 }
  0xc7   : > { %3125 = vmatmul.mubr.msk.bf16.gmra.mrb[44].mxu0 %vm1132_vm2, %v880_v51  ;;  %3161 = vmatmul.mubr.msk.bf16.gmra.mrb[44].mxu1 %vm922_vm1, %v3898_v43 }
  0xc8   : > { %3128 = vmatprep.mubr.msk.bf16.mxu0 %vm1132_vm2, %v881_v14  ;;  %3164 = vmatprep.mubr.msk.bf16.mxu1 %vm922_vm1, %v3902_v46 }
  0xcf   : > { %3129 = vmatmul.mubr.msk.bf16.gmra.mrb[48].mxu0 %vm1132_vm2, %v882_v38  ;;  %3165 = vmatmul.mubr.msk.bf16.gmra.mrb[48].mxu1 %vm922_vm1, %v3944_v37 }
  0xd0   : > { %3132 = vmatprep.mubr.msk.bf16.mxu0 %vm1132_vm2, %v883_v35  ;;  %3168 = vmatprep.mubr.msk.bf16.mxu1 %vm922_vm1, %v3954_v57 }
  0xd7   : > { %3133 = vmatmul.mubr.msk.bf16.gmra.mrb[52].mxu0 %vm1132_vm2, %v884_v36  ;;  %3169 = vmatmul.mubr.msk.bf16.gmra.mrb[52].mxu1 %vm922_vm1, %v3992_v53 }
  0xd8   : > { %3136 = vmatprep.mubr.msk.bf16.mxu0 %vm1132_vm2, %v885_v22  ;;  %3172 = vmatprep.mubr.msk.bf16.mxu1 %vm922_vm1, %v3996_v55 }
  0xdf   : > { %3137 = vmatmul.mubr.msk.bf16.gmra.mrb[56].mxu0 %vm1132_vm2, %v886_v21  ;;  %3173 = vmatmul.mubr.msk.bf16.gmra.mrb[56].mxu1 %vm922_vm1, %v4028_v47 }
  0xe0   : > { %3140 = vmatprep.mubr.msk.bf16.mxu0 %vm1132_vm2, %v887_v28  ;;  %3176 = vmatprep.mubr.msk.bf16.mxu1 %vm922_vm1, %v4034_v59 }
  0xe7   : > { %3141 = vmatmul.mubr.msk.bf16.gmra.mrb[60].mxu0 %vm1132_vm2, %v888_v13  ;;  %3177 = vmatmul.mubr.msk.bf16.gmra.mrb[60].mxu1 %vm922_vm1, %v4058_v2 }
 0x142   : > { %v3010_v23 = vpop.f32.mrb[0].mxu0  ;;  %v3080_v40 = vpop.f32.mrb[0].mxu1 }
 0x143   : > { %v1355_v62 = vadd.f32 %v3010_v23, %v4208_v56  ;;  %v1864_v17 = vadd.f32 %v3080_v40, %v4213_v10  ;;  %v1219_v54 = vpop.f32.mrb[1].mxu0  ;;  %v1728_v43 = vpop.f32.mrb[1].mxu1 }
 0x144   : > { %v1862_v46 = vadd.f32 %v4213_v10, %v1728_v43  ;;  %v3011_v37 = vpop.f32.mrb[2].mxu0  ;;  %v3081_v57 = vpop.f32.mrb[2].mxu1  ;;  %v1353_v36 = vadd.f32 %v4208_v56, %v1219_v54 }
 0x145   : > { %v1865_v21 = vadd.f32 %v3081_v57, %v4213_v10  ;;  %v1222_v53 = vpop.f32.mrb[3].mxu0  ;;  %v1731_v55 = vpop.f32.mrb[3].mxu1  ;;  %v1387_v28 = vmul.f32 0.5, %v1355_v62  ;;  %v1896_v38 = vmul.f32 0.5, %v1864_v17  ;;  %v1356_v47 = vadd.f32 %v3011_v37, %v4208_v56 }
 0x146   : > { %v1894_v59 = vmul.f32 0.5, %v1862_v46  ;;  %v1863_v25 = vadd.f32 %v4213_v10, %v1731_v55  ;;  %v1385_v7 = vmul.f32 0.5, %v1353_v36  ;;  %v1354_v0 = vadd.f32 %v4208_v56, %v1222_v53 }
 0x147   : > { %v1897_v2 = vmul.f32 0.5, %v1865_v21  ;;  %3272 = vtanh.f32 %v1387_v28  ;;  %v1388_v52 = vmul.f32 0.5, %v1356_v47 }
 0x148   : > { %3274 = vtanh.f32 %v1896_v38  ;;  %v1895_v14 = vmul.f32 0.5, %v1863_v25  ;;  %v1386_v13 = vmul.f32 0.5, %v1354_v0 }
 0x149   : > { %3276 = vtanh.f32 %v1894_v59 }
 0x14a   : > { %v3014_v34 = vpop.f32.mrb[4].mxu0  ;;  %v3084_v39 = vpop.f32.mrb[4].mxu1  ;;  %3278 = vtanh.f32 %v1897_v2 }
 0x14b   : > { %v1868_v19 = vadd.f32 %v3084_v39, %v4213_v10  ;;  %v1235_v29 = vpop.f32.mrb[5].mxu0  ;;  %v1744_v51 = vpop.f32.mrb[5].mxu1  ;;  %v1359_v35 = vadd.f32 %v3014_v34, %v4208_v56  ;;  %3280 = vtanh.f32 %v1385_v7 }
 0x14c   : > { %v3015_v42 = vpop.f32.mrb[6].mxu0  ;;  %v3085_v22 = vpop.f32.mrb[6].mxu1  ;;  %v1866_v1 = vadd.f32 %v4213_v10, %v1744_v51  ;;  %v1357_v41 = vadd.f32 %v4208_v56, %v1235_v29  ;;  %3282 = vtanh.f32 %v1388_v52 }
 0x14d   : > { %v1238_v8 = vpop.f32.mrb[7].mxu0  ;;  %v1747_v18 = vpop.f32.mrb[7].mxu1  ;;  %v1900_v26 = vmul.f32 0.5, %v1868_v19  ;;  %v1869_v23 = vadd.f32 %v3085_v22, %v4213_v10  ;;  %3284 = vtanh.f32 %v1895_v14  ;;  %v1391_v40 = vmul.f32 0.5, %v1359_v35 }
 0x14e   : > { %v1898_v62 = vmul.f32 0.5, %v1866_v1  ;;  %v1360_v17 = vadd.f32 %v3015_v42, %v4208_v56  ;;  %v1389_v54 = vmul.f32 0.5, %v1357_v41  ;;  %v1867_v57 = vadd.f32 %v4213_v10, %v1747_v18 }
 0x14f   : > { %3286 = vtanh.f32 %v1900_v26  ;;  %v1901_v37 = vmul.f32 0.5, %v1869_v23  ;;  %v1358_v28 = vadd.f32 %v4208_v56, %v1238_v8 }
 0x150   : > { %3288 = vtanh.f32 %v1386_v13  ;;  %v1392_v59 = vmul.f32 0.5, %v1360_v17  ;;  %v1899_v52 = vmul.f32 0.5, %v1867_v57 }
 0x151   : > { %v3273_v55 = vpop.eup %3272  ;;  %3290 = vtanh.f32 %v1391_v40  ;;  %v1390_v51 = vmul.f32 0.5, %v1358_v28 }
 0x152   : > { %v3018_v43 = vpop.f32.mrb[8].mxu0  ;;  %v3088_v46 = vpop.f32.mrb[8].mxu1  ;;  %3292 = vtanh.f32 %v1898_v62 }
 0x153   : > { %v1251_v21 = vpop.f32.mrb[9].mxu0  ;;  %v1760_v53 = vpop.f32.mrb[9].mxu1  ;;  %3294 = vtanh.f32 %v1389_v54  ;;  %v1872_v34 = vadd.f32 %v3088_v46, %v4213_v10  ;;  %v1363_v0 = vadd.f32 %v3018_v43, %v4208_v56  ;;  %v4240_v54 = vmul.f32 0.5, %v3273_v55 }
 0x154   : > { %v3019_v36 = vpop.f32.mrb[10].mxu0  ;;  %v3089_v38 = vpop.f32.mrb[10].mxu1  ;;  %3296 = vtanh.f32 %v1901_v37  ;;  %v1870_v14 = vadd.f32 %v4213_v10, %v1760_v53  ;;  %v1361_v18 = vadd.f32 %v4208_v56, %v1251_v21 }
 0x155   : > { %v3275_v47 = vpop.eup %3274  ;;  %v4231_v25 = vpop.f32.mrb[11].mxu0  ;;  %3298 = vtanh.f32 %v1392_v59  ;;  %v1904_v8 = vmul.f32 0.5, %v1872_v34  ;;  %v1395_v13 = vmul.f32 0.5, %v1363_v0  ;;  %v1873_v23 = vadd.f32 %v3089_v38, %v4213_v10 }
 0x156   : > { %v1763_v2 = vpop.f32.mrb[11].mxu1  ;;  %v3277_v7 = vpop.eup %3276  ;;  %v1960_v29 = vmul.f32 0.5, %v3275_v47  ;;  %3300 = vtanh.f32 %v1899_v52  ;;  %v1902_v46 = vmul.f32 0.5, %v1870_v14  ;;  %v1364_v52 = vadd.f32 %v3019_v36, %v4208_v56 }
 0x157   : > { %v3279_v39 = vpop.eup %3278  ;;  %v1958_v42 = vmul.f32 0.5, %v3277_v7  ;;  %3302 = vtanh.f32 %v1390_v51  ;;  %v1871_v51 = vadd.f32 %v4213_v10, %v1763_v2 }
 0x158   : > { %v3281_v19 = vpop.eup %3280  ;;  %v1961_v1 = vmul.f32 0.5, %v3279_v39  ;;  %v4242_v43 = vadd.f32 0.5, %v1960_v29  ;;  %3304 = vtanh.f32 %v1904_v8  ;;  %v1393_v39 = vmul.f32 0.5, %v1361_v18 }
 0x159   : > { %v3283_v35 = vpop.eup %3282  ;;  %v4246_v53 = vmul.f32 0.5, %v3281_v19  ;;  %v4248_v28 = vadd.f32 0.5, %v1958_v42  ;;  %3306 = vtanh.f32 %v1395_v13  ;;  %v1905_v19 = vmul.f32 0.5, %v1873_v23 }
 0x15a   : > { %v3285_v22 = vpop.eup %3284  ;;  %v3022_v26 = vpop.f32.mrb[12].mxu0  ;;  %5157 = vst [vmem:[#allocation13_spill] sm:$0xff] %v4242_v43  ;;  %v4250_v47 = vmul.f32 0.5, %v3283_v35  ;;  %v4256_v34 = vadd.f32 0.5, %v1961_v1  ;;  %v4263_v42 = vmul.f32 %v4242_v43, %v3694_v50  ;;  %3308 = vtanh.f32 %v1902_v46 }
 0x15b   : > { %v3092_v41 = vpop.f32.mrb[12].mxu1  ;;  %v1267_v40 = vpop.f32.mrb[13].mxu0  ;;  %5158 = vst [vmem:[#allocation14_spill] sm:$0xff] %v4248_v28  ;;  %v1959_v38 = vmul.f32 0.5, %v3285_v22  ;;  %v4270_v36 = vmul.f32 %v4248_v28, %v3687_v44  ;;  %3310 = vtanh.f32 %v1905_v19  ;;  %v1362_v44 = vadd.f32 %v4208_v56, %v4231_v25 }
 0x15c   : > { %v4238_v62 = vpop.f32.mrb[13].mxu1  ;;  %v3287_v17 = vpop.eup %3286  ;;  %5159 = vst [vmem:[#allocation15_spill] sm:$0xff] %v4256_v34  ;;  %5160 = vst [vmem:[#allocation16_spill] sm:$0xff] %v4263_v42  ;;  %v1876_v50 = vadd.f32 %v3092_v41, %v4213_v10  ;;  %v1367_v13 = vadd.f32 %v3022_v26, %v4208_v56  ;;  %3312 = vtanh.f32 %v1393_v39 }
 0x15d   : > { %v4244_v37 = vpop.f32.mrb[14].mxu0  ;;  %v3093_v57 = vpop.f32.mrb[14].mxu1  ;;  %v1964_v29 = vmul.f32 0.5, %v3287_v17  ;;  %5161 = vst [vmem:[#allocation17_spill] sm:$0xff] %v4270_v36  ;;  %v4272_v18 = vadd.f32 0.5, %v1959_v38  ;;  %v1396_v17 = vmul.f32 0.5, %v1364_v52  ;;  %v1874_v25 = vadd.f32 %v4213_v10, %v4238_v62 }
 0x15e   : > { %v3289_v21 = vpop.eup %3288  ;;  %v4252_v59 = vpop.f32.mrb[15].mxu0  ;;  %v1903_v38 = vmul.f32 0.5, %v1871_v51  ;;  %v1908_v42 = vmul.f32 0.5, %v1876_v50  ;;  %v1877_v39 = vadd.f32 %v3093_v57, %v4213_v10  ;;  %v1399_v43 = vmul.f32 0.5, %v1367_v13 }
 0x15f   : > { %v4254_v7 = vpop.f32.mrb[15].mxu1  ;;  %v3291_v55 = vpop.eup %3290  ;;  %v4265_v22 = vmul.f32 0.5, %v3289_v21  ;;  %5162 = vst [vmem:[#allocation18_spill] sm:$0xff] %v4272_v18  ;;  %v4280_v20 = vadd.f32 0.5, %v1964_v29  ;;  %v4300_v51 = vmul.f32 %v4272_v18, %v3689_v45  ;;  %v1394_v45 = vmul.f32 0.5, %v1362_v44 }
 0x160   : > { %v3293_v0 = vpop.eup %3292  ;;  %v4274_v2 = vmul.f32 0.5, %v3291_v55  ;;  %3314 = vtanh.f32 %v1903_v38  ;;  %v1368_v44 = vadd.f32 %v4244_v37, %v4208_v56 }
 0x161   : > { %v3295_v14 = vpop.eup %3294  ;;  %v1962_v23 = vmul.f32 0.5, %v3293_v0  ;;  %5163 = vst [vmem:[#allocation19_spill] sm:$0xff] %v4280_v20  ;;  %v4288_v0 = vmul.f32 %v4256_v34, %v3709_v61  ;;  %5165 = vst [vmem:[#allocation21_spill] sm:$0xff] %v4300_v51  ;;  %v1365_v61 = vadd.f32 %v4208_v56, %v1267_v40  ;;  %3316 = vtanh.f32 %v1396_v17 }
 0x162   : > { %v3297_v1 = vpop.eup %3296  ;;  %v4278_v21 = vpop.f32.mrb[16].mxu0  ;;  %v4290_v52 = vmul.f32 0.5, %v3295_v14  ;;  %3318 = vtanh.f32 %v1908_v42  ;;  %v1875_v17 = vadd.f32 %v4213_v10, %v4254_v7 }
 0x163   : > { %v3096_v46 = vpop.f32.mrb[16].mxu1  ;;  %v3299_v35 = vpop.eup %3298  ;;  %5164 = vst [vmem:[#allocation20_spill] sm:$0xff] %v4288_v0  ;;  %v1965_v41 = vmul.f32 0.5, %v3297_v1  ;;  %v4307_v26 = vadd.f32 0.5, %v1962_v23  ;;  %v1397_v62 = vmul.f32 0.5, %v1365_v61  ;;  %3320 = vtanh.f32 %v1394_v45 }
 0x164   : > { %v4284_v8 = vpop.f32.mrb[17].mxu0  ;;  %v1792_v55 = vpop.f32.mrb[17].mxu1  ;;  %v4309_v34 = vmul.f32 0.5, %v3299_v35  ;;  %v4319_v35 = vmul.f32 %v4280_v20, %v3757_v30  ;;  %v1909_v61 = vmul.f32 0.5, %v1877_v39  ;;  %3322 = vtanh.f32 %v1399_v43 }
 0x165   : > { %v4293_v36 = vpop.f32.mrb[18].mxu0  ;;  %v4295_v29 = vpop.f32.mrb[18].mxu1  ;;  %5166 = vst [vmem:[#allocation22_spill] sm:$0xff] %v4307_v26  ;;  %v4315_v51 = vadd.f32 0.5, %v1965_v41  ;;  %v1906_v41 = vmul.f32 0.5, %v1874_v25  ;;  %v4332_v30 = vmul.f32 %v4307_v26, %v3729_v11  ;;  %v1880_v7 = vadd.f32 %v3096_v46, %v4213_v10 }
 0x166   : > { %v3301_v19 = vpop.eup %3300  ;;  %v4303_v0 = vpop.f32.mrb[19].mxu0  ;;  %5168 = vst [vmem:[#allocation24_spill] sm:$0xff] %v4319_v35  ;;  %3324 = vtanh.f32 %v1397_v62  ;;  %v1400_v45 = vmul.f32 0.5, %v1368_v44  ;;  %v1366_v39 = vadd.f32 %v4208_v56, %v4252_v59  ;;  %v1878_v46 = vadd.f32 %v4213_v10, %v1792_v55 }
 0x167   : > { %v4305_v14 = vpop.f32.mrb[19].mxu1  ;;  %v3303_v1 = vpop.eup %3302  ;;  %5167 = vst [vmem:[#allocation23_spill] sm:$0xff] %v4315_v51  ;;  %v1963_v18 = vmul.f32 0.5, %v3301_v19  ;;  %5170 = vst [vmem:[#allocation26_spill] sm:$0xff] %v4332_v30  ;;  %v4354_v43 = vmul.f32 %v4315_v51, %v3759_v31  ;;  %3326 = vtanh.f32 %v1906_v41  ;;  %v1371_v59 = vadd.f32 %v4278_v21, %v4208_v56 }
 0x168   : > { %v3305_v40 = vpop.eup %3304  ;;  %v4321_v50 = vmul.f32 0.5, %v3303_v1  ;;  %3328 = vtanh.f32 %v1909_v61  ;;  %v1881_v31 = vadd.f32 %v4295_v29, %v4213_v10  ;;  %v1369_v21 = vadd.f32 %v4208_v56, %v4284_v8 }
 0x169   : > { %v3307_v23 = vpop.eup %3306  ;;  %v1968_v1 = vmul.f32 0.5, %v3305_v40  ;;  %v4339_v25 = vadd.f32 0.5, %v1963_v18  ;;  %5172 = vst [vmem:[#allocation28_spill] sm:$0xff] %v4354_v43  ;;  %v1907_v18 = vmul.f32 0.5, %v1875_v17  ;;  %3330 = vtanh.f32 %v1400_v45 }
 0x16a   : > { %5169 = vst [vmem:[#allocation25_spill] sm:$0xff] %v4321_v50  ;;  %v3309_v38 = vpop.eup %3308  ;;  %v4328_v13 = vpop.f32.mrb[20].mxu0  ;;  %v4357_v20 = vmul.f32 0.5, %v3307_v23  ;;  %v1912_v50 = vmul.f32 0.5, %v1880_v7  ;;  %v1398_v17 = vmul.f32 0.5, %v1366_v39  ;;  %v1910_v7 = vmul.f32 0.5, %v1878_v46 }
 0x16b   : > { %v3100_v19 = vpop.f32.mrb[20].mxu1  ;;  %v4334_v28 = vpop.f32.mrb[21].mxu0  ;;  %5171 = vst [vmem:[#allocation27_spill] sm:$0xff] %v4339_v25  ;;  %v1966_v30 = vmul.f32 0.5, %v3309_v38  ;;  %v4359_v62 = vadd.f32 0.5, %v1968_v1  ;;  %v4368_v55 = vmul.f32 %v4339_v25, %v3731_v12  ;;  %3332 = vtanh.f32 %v1907_v18 }
 0x16c   : > { %v4336_v37 = vpop.f32.mrb[21].mxu1  ;;  %v4342_v57 = vpop.f32.mrb[22].mxu0  ;;  %5173 = vst [vmem:[#allocation29_spill] sm:$0xff] %v4357_v20  ;;  %3334 = vtanh.f32 %v1912_v50 }
 0x16d   : > { %v4344_v35 = vpop.f32.mrb[22].mxu1  ;;  %v3311_v11 = vpop.eup %3310  ;;  %5174 = vst [vmem:[#allocation30_spill] sm:$0xff] %v4359_v62  ;;  %5175 = vst [vmem:[#allocation31_spill] sm:$0xff] %v4368_v55  ;;  %v4370_v23 = vadd.f32 0.5, %v1966_v30  ;;  %v4383_v12 = vmul.f32 %v4359_v62, %v3803_v6  ;;  %v1403_v30 = vmul.f32 0.5, %v1371_v59  ;;  %v1913_v55 = vmul.f32 0.5, %v1881_v31 }
 0x16e   : > { %v4348_v40 = vpop.f32.mrb[23].mxu0  ;;  %v4350_v26 = vpop.f32.mrb[23].mxu1  ;;  %v1969_v38 = vmul.f32 0.5, %v3311_v11  ;;  %3336 = vtanh.f32 %v1398_v17  ;;  %v1401_v31 = vmul.f32 0.5, %v1369_v21 }
 0x16f   : > { %v3313_v42 = vpop.eup %3312  ;;  %5176 = vst [vmem:[#allocation32_spill] sm:$0xff] %v4370_v23  ;;  %5178 = vst [vmem:[#allocation34_spill] sm:$0xff] %v4383_v12  ;;  %v4407_v50 = vmul.f32 %v4370_v23, %v3782_v48  ;;  %3338 = vtanh.f32 %v1910_v7 }
 0x170   : > { %v3315_v41 = vpop.eup %3314  ;;  %v4372_v61 = vmul.f32 0.5, %v3313_v42  ;;  %v1879_v42 = vadd.f32 %v4213_v10, %v4305_v14  ;;  %v4391_v18 = vadd.f32 0.5, %v1969_v38  ;;  %v1884_v14 = vadd.f32 %v3100_v19, %v4213_v10 }
 0x171   : > { %v3317_v1 = vpop.eup %3316  ;;  %v1967_v46 = vmul.f32 0.5, %v3315_v41  ;;  %5181 = vst [vmem:[#allocation37_spill] sm:$0xff] %v4407_v50  ;;  %v1372_v41 = vadd.f32 %v4293_v36, %v4208_v56  ;;  %3340 = vtanh.f32 %v1403_v30  ;;  %v1370_v19 = vadd.f32 %v4208_v56, %v4303_v0 }
 0x172   : > { %5177 = vst [vmem:[#allocation33_spill] sm:$0xff] %v4372_v61  ;;  %v4376_v11 = vpop.f32.mrb[24].mxu0  ;;  %v4378_v29 = vpop.f32.mrb[24].mxu1  ;;  %5179 = vst [vmem:[#allocation35_spill] sm:$0xff] %v4391_v18  ;;  %v4398_v12 = vmul.f32 0.5, %v3317_v1  ;;  %v1911_v17 = vmul.f32 0.5, %v1879_v42  ;;  %3342 = vtanh.f32 %v1913_v55  ;;  %v4420_v21 = vmul.f32 %v4391_v18, %v3813_v15 }
 0x173   : > { %v4387_v45 = vpop.f32.mrb[25].mxu0  ;;  %v4389_v39 = vpop.f32.mrb[25].mxu1  ;;  %v4416_v20 = vadd.f32 0.5, %v1967_v46  ;;  %v1375_v36 = vadd.f32 %v4328_v13, %v4208_v56  ;;  %v1916_v7 = vmul.f32 0.5, %v1884_v14  ;;  %v1882_v0 = vadd.f32 %v4213_v10, %v4336_v37 }
 0x174   : > { %v3319_v8 = vpop.eup %3318  ;;  %v4393_v43 = vpop.f32.mrb[26].mxu0  ;;  %5180 = vst [vmem:[#allocation36_spill] sm:$0xff] %v4398_v12  ;;  %5183 = vst [vmem:[#allocation39_spill] sm:$0xff] %v4420_v21  ;;  %3344 = vtanh.f32 %v1401_v31  ;;  %v1404_v42 = vmul.f32 0.5, %v1372_v41  ;;  %v1402_v13 = vmul.f32 0.5, %v1370_v19  ;;  %v1376_v19 = vadd.f32 %v4342_v57, %v4208_v56 }
 0x175   : > { %v4395_v44 = vpop.f32.mrb[26].mxu1  ;;  %v3321_v6 = vpop.eup %3320  ;;  %v1972_v1 = vmul.f32 0.5, %v3319_v8  ;;  %5182 = vst [vmem:[#allocation38_spill] sm:$0xff] %v4416_v20  ;;  %v1373_v8 = vadd.f32 %v4208_v56, %v4334_v28  ;;  %3346 = vtanh.f32 %v1911_v17  ;;  %v1914_v21 = vmul.f32 0.5, %v1882_v0 }
 0x176   : > { %v4401_v62 = vpop.f32.mrb[27].mxu0  ;;  %v4403_v25 = vpop.f32.mrb[27].mxu1  ;;  %v4414_v61 = vmul.f32 0.5, %v3321_v6  ;;  %3348 = vtanh.f32 %v1916_v7  ;;  %v1885_v31 = vadd.f32 %v4344_v35, %v4213_v10  ;;  %v1883_v57 = vadd.f32 %v4213_v10, %v4350_v26 }
 0x177   : > { %v3323_v38 = vpop.eup %3322  ;;  %v4434_v6 = vadd.f32 0.5, %v1972_v1  ;;  %v1407_v1 = vmul.f32 0.5, %v1375_v36  ;;  %3350 = vtanh.f32 %v1404_v42  ;;  %v1405_v0 = vmul.f32 0.5, %v1373_v8 }
 0x178   : > { %v3325_v59 = vpop.eup %3324  ;;  %v4426_v30 = vmul.f32 0.5, %v3323_v38  ;;  %3352 = vtanh.f32 %v1402_v13  ;;  %v1374_v13 = vadd.f32 %v4208_v56, %v4348_v40  ;;  %v1917_v26 = vmul.f32 0.5, %v1885_v31 }
 0x179   : > { %v3327_v51 = vpop.eup %3326  ;;  %5185 = vst [vmem:[#allocation41_spill] sm:$0xff] %v4434_v6  ;;  %v4436_v12 = vmul.f32 0.5, %v3325_v59  ;;  %v4449_v59 = vmul.f32 %v4416_v20, %v3784_v49  ;;  %3354 = vtanh.f32 %v1914_v21  ;;  %v1408_v20 = vmul.f32 0.5, %v1376_v19 }
 0x17a   : > { %v3329_v48 = vpop.eup %3328  ;;  %5184 = vst [vmem:[#allocation40_spill] sm:$0xff] %v4426_v30  ;;  %v4430_v55 = vpop.f32.mrb[28].mxu0  ;;  %v1970_v41 = vmul.f32 0.5, %v3327_v51  ;;  %3356 = vtanh.f32 %v1407_v1  ;;  %v1915_v1 = vmul.f32 0.5, %v1883_v57  ;;  %v1888_v19 = vadd.f32 %v4378_v29, %v4213_v10 }
 0x17b   : > { %v4432_v46 = vpop.f32.mrb[28].mxu1  ;;  %v3331_v15 = vpop.eup %3330  ;;  %5186 = vst [vmem:[#allocation42_spill] sm:$0xff] %v4436_v12  ;;  %v1973_v28 = vmul.f32 0.5, %v3329_v48  ;;  %5187 = vst [vmem:[#allocation43_spill] sm:$0xff] %v4449_v59  ;;  %v4466_v59 = vmul.f32 %v4434_v6, %v3853_v58  ;;  %3358 = vtanh.f32 %v1405_v0  ;;  %v1379_v58 = vadd.f32 %v4376_v11, %v4208_v56 }
 0x17c   : > { %v4438_v14 = vpop.f32.mrb[29].mxu0  ;;  %v4440_v37 = vpop.f32.mrb[29].mxu1  ;;  %v4457_v48 = vmul.f32 0.5, %v3331_v15  ;;  %v4468_v15 = vadd.f32 0.5, %v1970_v41  ;;  %3360 = vtanh.f32 %v1408_v20  ;;  %v1920_v20 = vmul.f32 0.5, %v1888_v19 }
 0x17d   : > { %v3333_v38 = vpop.eup %3332  ;;  %v4443_v18 = vpop.f32.mrb[30].mxu0  ;;  %5189 = vst [vmem:[#allocation45_spill] sm:$0xff] %v4466_v59  ;;  %v4470_v42 = vadd.f32 0.5, %v1973_v28  ;;  %3362 = vtanh.f32 %v1917_v26  ;;  %v1377_v59 = vadd.f32 %v4208_v56, %v4387_v45  ;;  %v1886_v26 = vadd.f32 %v4213_v10, %v4389_v39 }
 0x17e   : > { %v4445_v50 = vpop.f32.mrb[30].mxu1  ;;  %v4453_v17 = vpop.f32.mrb[31].mxu0  ;;  %5188 = vst [vmem:[#allocation44_spill] sm:$0xff] %v4457_v48  ;;  %v1971_v36 = vmul.f32 0.5, %v3333_v38  ;;  %5190 = vst [vmem:[#allocation46_spill] sm:$0xff] %v4468_v15  ;;  %v4493_v11 = vmul.f32 %v4468_v15, %v3827_v32  ;;  %v1406_v48 = vmul.f32 0.5, %v1374_v13  ;;  %3364 = vtanh.f32 %v1915_v1 }
 0x17f   : > { %v4455_v23 = vpop.f32.mrb[31].mxu1  ;;  %v3335_v51 = vpop.eup %3334  ;;  %5191 = vst [vmem:[#allocation47_spill] sm:$0xff] %v4470_v42  ;;  %v4510_v32 = vmul.f32 %v4470_v42, %v3867_v9 }
 0x180   : > { %v3337_v12 = vpop.eup %3336  ;;  %v1976_v35 = vmul.f32 0.5, %v3335_v51  ;;  %v4482_v21 = vadd.f32 0.5, %v1971_v36  ;;  %5194 = vst [vmem:[#allocation50_spill] sm:$0xff] %v4493_v11  ;;  %3366 = vtanh.f32 %v1406_v48 }
 0x181   : > { %v3339_v7 = vpop.eup %3338  ;;  %v4474_v49 = vmul.f32 0.5, %v3337_v12  ;;  %5197 = vst [vmem:[#allocation53_spill] sm:$0xff] %v4510_v32 }
 0x182   : > { %v3341_v8 = vpop.eup %3340  ;;  %v4478_v41 = vpop.f32.mrb[32].mxu0  ;;  %5193 = vst [vmem:[#allocation49_spill] sm:$0xff] %v4482_v21  ;;  %v1974_v51 = vmul.f32 0.5, %v3339_v7  ;;  %v4502_v6 = vadd.f32 0.5, %v1976_v35 }
 0x183   : > { %v3343_v38 = vpop.eup %3342  ;;  %5192 = vst [vmem:[#allocation48_spill] sm:$0xff] %v4474_v49  ;;  %v4480_v28 = vpop.f32.mrb[32].mxu1  ;;  %v4496_v36 = vmul.f32 0.5, %v3341_v8  ;;  %v1411_v8 = vmul.f32 0.5, %v1379_v58 }
 0x184   : > { %v4486_v40 = vpop.f32.mrb[33].mxu0  ;;  %v4488_v12 = vpop.f32.mrb[33].mxu1  ;;  %5196 = vst [vmem:[#allocation52_spill] sm:$0xff] %v4502_v6  ;;  %v1977_v49 = vmul.f32 0.5, %v3343_v38  ;;  %v4515_v15 = vadd.f32 0.5, %v1974_v51  ;;  %v4519_v38 = vmul.f32 %v4482_v21, %v3829_v33  ;;  %v1380_v51 = vadd.f32 %v4393_v43, %v4208_v56 }
 0x185   : > { %v3345_v0 = vpop.eup %3344  ;;  %5195 = vst [vmem:[#allocation51_spill] sm:$0xff] %v4496_v36  ;;  %v4498_v7 = vpop.f32.mrb[34].mxu0  ;;  %v4532_v33 = vmul.f32 %v4502_v6, %v3916_v3  ;;  %3368 = vtanh.f32 %v1411_v8  ;;  %v1889_v43 = vadd.f32 %v4395_v44, %v4213_v10  ;;  %v1378_v21 = vadd.f32 %v4208_v56, %v4401_v62 }
 0x186   : > { %v4500_v57 = vpop.f32.mrb[34].mxu1  ;;  %v3347_v29 = vpop.eup %3346  ;;  %5198 = vst [vmem:[#allocation54_spill] sm:$0xff] %v4515_v15  ;;  %5199 = vst [vmem:[#allocation55_spill] sm:$0xff] %v4519_v38  ;;  %v4521_v36 = vmul.f32 0.5, %v3345_v0  ;;  %v4526_v32 = vadd.f32 0.5, %v1977_v49  ;;  %v1409_v0 = vmul.f32 0.5, %v1377_v59  ;;  %3370 = vtanh.f32 %v1920_v20 }
 0x187   : > { %v4504_v30 = vpop.f32.mrb[35].mxu0  ;;  %v4506_v31 = vpop.f32.mrb[35].mxu1  ;;  %v1975_v9 = vmul.f32 0.5, %v3347_v29  ;;  %5201 = vst [vmem:[#allocation57_spill] sm:$0xff] %v4532_v33  ;;  %v4549_v59 = vmul.f32 %v4515_v15, %v3869_v5  ;;  %v1918_v49 = vmul.f32 0.5, %v1886_v26  ;;  %v1412_v38 = vmul.f32 0.5, %v1380_v51 }
 0x188   : > { %v3349_v11 = vpop.eup %3348  ;;  %5200 = vst [vmem:[#allocation56_spill] sm:$0xff] %v4526_v32  ;;  %3372 = vtanh.f32 %v1409_v0  ;;  %v1921_v62 = vmul.f32 0.5, %v1889_v43  ;;  %v1410_v0 = vmul.f32 0.5, %v1378_v21  ;;  %v1384_v43 = vadd.f32 %v4443_v18, %v4208_v56 }
 0x189   : > { %v3351_v13 = vpop.eup %3350  ;;  %v1980_v19 = vmul.f32 0.5, %v3349_v11  ;;  %5202 = vst [vmem:[#allocation58_spill] sm:$0xff] %v4549_v59  ;;  %v4553_v33 = vadd.f32 0.5, %v1975_v9  ;;  %v4568_v9 = vmul.f32 %v4526_v32, %v3918_v4  ;;  %v1383_v59 = vadd.f32 %v4430_v55, %v4208_v56 }
 0x18a   : > { %v3353_v58 = vpop.eup %3352  ;;  %v4534_v29 = vpop.f32.mrb[36].mxu0  ;;  %v4539_v45 = vmul.f32 0.5, %v3351_v13  ;;  %3374 = vtanh.f32 %v1918_v49  ;;  %v1892_v49 = vadd.f32 %v4432_v46, %v4213_v10  ;;  %v1890_v46 = vadd.f32 %v4213_v10, %v4440_v37  ;;  %v4624_v37 = vld [vmem:[%s5109_s13] ss:$0 sm:$0xff] }
 0x18b   : > { %v3355_v1 = vpop.eup %3354  ;;  %v4536_v39 = vpop.f32.mrb[36].mxu1  ;;  %v4551_v8 = vmul.f32 0.5, %v3353_v58  ;;  %5204 = vst [vmem:[#allocation60_spill] sm:$0xff] %v4553_v33  ;;  %5205 = vst [vmem:[#allocation61_spill] sm:$0xff] %v4568_v9  ;;  %v4570_v26 = vadd.f32 0.5, %v1980_v19  ;;  %v1887_v58 = vadd.f32 %v4213_v10, %v4403_v25  ;;  %v4583_v4 = vmul.f32 %v4553_v33, %v3871_v16 }
 0x18c   : > { %v3357_v35 = vpop.eup %3356  ;;  %v4543_v48 = vpop.f32.mrb[37].mxu0  ;;  %v1978_v6 = vmul.f32 0.5, %v3355_v1  ;;  %v1381_v25 = vadd.f32 %v4208_v56, %v4438_v14  ;;  %3376 = vtanh.f32 %v1412_v38  ;;  %v1415_v18 = vmul.f32 0.5, %v1383_v59 }
 0x18d   : > { %v4545_v3 = vpop.f32.mrb[37].mxu1  ;;  %v3359_v11 = vpop.eup %3358  ;;  %5203 = vst [vmem:[#allocation59_spill] sm:$0xff] %v4551_v8  ;;  %5206 = vst [vmem:[#allocation62_spill] sm:$0xff] %v4570_v26  ;;  %v4574_v1 = vmul.f32 0.5, %v3357_v35  ;;  %v1919_v16 = vmul.f32 0.5, %v1887_v58  ;;  %3378 = vtanh.f32 %v1921_v62  ;;  %v1924_v33 = vmul.f32 0.5, %v1892_v49 }
 0x18e   : > { %v4555_v13 = vpop.f32.mrb[38].mxu0  ;;  %v4557_v20 = vpop.f32.mrb[38].mxu1  ;;  %v4576_v51 = vmul.f32 0.5, %v3359_v11  ;;  %5207 = vst [vmem:[#allocation63_spill] sm:$0xff] %v4583_v4  ;;  %v4587_v35 = vadd.f32 0.5, %v1978_v6  ;;  %v4594_v11 = vmul.f32 %v4570_v26, %v3957_v60  ;;  %v1413_v58 = vmul.f32 0.5, %v1381_v25 }
 0x18f   : > { %v4562_v42 = vpop.f32.mrb[39].mxu0  ;;  %v4564_v5 = vpop.f32.mrb[39].mxu1  ;;  %v1382_v26 = vadd.f32 %v4208_v56, %v4453_v17  ;;  %3380 = vtanh.f32 %v1410_v0  ;;  %v1483_v49 = vadd.f32 0.5, %v4240_v54 }
 0x190   : > { %v3361_v44 = vpop.eup %3360  ;;  %5208 = vst [vmem:[#allocation64_spill] sm:$0xff] %v4587_v35  ;;  %5209 = vst [vmem:[#allocation65_spill] sm:$0xff] %v4594_v11  ;;  %v4619_v62 = vmul.f32 %v4587_v35, %v3934_v24  ;;  %3382 = vtanh.f32 %v1919_v16  ;;  %v4635_v24 = vld [vmem:[%s5110_s14] ss:$0 sm:$0xff]  ;;  %v1922_v16 = vmul.f32 0.5, %v1890_v46 }
 0x191   : > { %v3363_v15 = vpop.eup %3362  ;;  %v4602_v38 = vmul.f32 0.5, %v3361_v44  ;;  %v1414_v59 = vmul.f32 0.5, %v1382_v26  ;;  %3384 = vtanh.f32 %v1415_v18  ;;  %v2080_v26 = vadd.f32 %v4478_v41, %v4624_v37 }
 0x192   : > { %v3365_v19 = vpop.eup %3364  ;;  %v4598_v8 = vpop.f32.mrb[40].mxu0  ;;  %v1981_v21 = vmul.f32 0.5, %v3363_v15  ;;  %5211 = vst [vmem:[#allocation67_spill] sm:$0xff] %v4619_v62  ;;  %v1893_v62 = vadd.f32 %v4445_v50, %v4213_v10  ;;  %3386 = vtanh.f32 %v1413_v58  ;;  %v2072_v50 = vadd.f32 %v4624_v37, %v4486_v40 }
 0x193   : > { %v4600_v14 = vpop.f32.mrb[40].mxu1  ;;  %v3367_v6 = vpop.eup %3366  ;;  %5210 = vst [vmem:[#allocation66_spill] sm:$0xff] %v4602_v38  ;;  %v1979_v11 = vmul.f32 0.5, %v3365_v19  ;;  %v1416_v19 = vmul.f32 0.5, %v1384_v43  ;;  %v2252_v18 = vadd.f32 %v4635_v24, %v4488_v12 }
 0x194   : > { %v4604_v4 = vpop.f32.mrb[41].mxu0  ;;  %v4606_v55 = vpop.f32.mrb[41].mxu1  ;;  %v4630_v17 = vmul.f32 0.5, %v3367_v6  ;;  %v4637_v0 = vadd.f32 0.5, %v1981_v21  ;;  %v2260_v21 = vadd.f32 %v4480_v28, %v4635_v24 }
 0x195   : > { %v3369_v60 = vpop.eup %3368  ;;  %v4612_v9 = vpop.f32.mrb[42].mxu0  ;;  %v4643_v32 = vadd.f32 0.5, %v1979_v11  ;;  %3388 = vtanh.f32 %v1416_v19  ;;  %v1481_v11 = vadd.f32 0.5, %v4246_v53 }
 0x196   : > { %v4614_v44 = vpop.f32.mrb[42].mxu1  ;;  %v3371_v15 = vpop.eup %3370  ;;  %5212 = vst [vmem:[#allocation68_spill] sm:$0xff] %v4630_v17  ;;  %5213 = vst [vmem:[#allocation69_spill] sm:$0xff] %v4637_v0  ;;  %v4639_v43 = vmul.f32 0.5, %v3369_v60  ;;  %3390 = vtanh.f32 %v1414_v59  ;;  %v4662_v28 = vmul.f32 %v4637_v0, %v3959_v63  ;;  %v2380_v19 = vmul.f32 %v2260_v21, %v1483_v49 }
 0x197   : > { %v4626_v25 = vpop.f32.mrb[43].mxu0  ;;  %v4628_v56 = vpop.f32.mrb[43].mxu1  ;;  %5215 = vst [vmem:[#allocation71_spill] sm:$0xff] %v4643_v32  ;;  %v1984_v6 = vmul.f32 0.5, %v3371_v15  ;;  %3392 = vtanh.f32 %v1924_v33  ;;  %v1484_v33 = vadd.f32 0.5, %v4250_v47  ;;  %v1925_v49 = vmul.f32 0.5, %v1893_v62 }
 0x198   : > { %5214 = vst [vmem:[#allocation70_spill] sm:$0xff] %v4639_v43  ;;  %v3373_v35 = vpop.eup %3372  ;;  %5216 = vst [vmem:[#allocation72_spill] sm:$0xff] %v4662_v28  ;;  %v2378_v43 = vmul.f32 %v2252_v18, %v1481_v11  ;;  %v2263_v28 = vadd.f32 %v4500_v57, %v4635_v24  ;;  %3394 = vtanh.f32 %v1922_v16  ;;  %v2412_v21 = vadd.f32 %v2380_v19, %v2080_v26  ;;  %v5219_v26 = vld [vmem:[#allocation5_spill] sm:$0xff] }
 0x199   : > { %v3375_v60 = vpop.eup %3374  ;;  %v4664_v15 = vmul.f32 0.5, %v3373_v35  ;;  %v4671_v59 = vadd.f32 0.5, %v1984_v6  ;;  %v1891_v35 = vadd.f32 %v4213_v10, %v4455_v23  ;;  %v1482_v10 = vadd.f32 0.5, %v4265_v22 }
 0x19a   : > { %v4655_v58 = vpop.f32.mrb[44].mxu0  ;;  %v4657_v46 = vpop.f32.mrb[44].mxu1  ;;  %v1982_v63 = vmul.f32 0.5, %v3375_v60  ;;  %v2410_v11 = vadd.f32 %v2378_v43, %v2072_v50  ;;  %v2083_v60 = vadd.f32 %v4498_v7, %v4624_v37  ;;  %v2381_v12 = vmul.f32 %v2263_v28, %v1484_v33 }
 0x19b   : > { %v3377_v41 = vpop.eup %3376  ;;  %v4666_v40 = vpop.f32.mrb[45].mxu0  ;;  %5217 = vst [vmem:[#allocation73_spill] sm:$0xff] %v4671_v59  ;;  %v2255_v47 = vadd.f32 %v4635_v24, %v4506_v31  ;;  %3396 = vtanh.f32 %v2412_v21  ;;  %v2096_v57 = vadd.f32 %v4534_v29, %v4624_v37  ;;  %v1487_v62 = vadd.f32 0.5, %v4274_v2 }
 0x19c   : > { %v4668_v53 = vpop.f32.mrb[45].mxu1  ;;  %v4673_v17 = vpop.f32.mrb[46].mxu0  ;;  %v2276_v43 = vadd.f32 %v4536_v39, %v4635_v24  ;;  %v4700_v7 = vmul.f32 %v4643_v32, %v5219_v26  ;;  %v1923_v50 = vmul.f32 0.5, %v1891_v35  ;;  %3398 = vtanh.f32 %v2410_v11 }
 0x19d   : > { %v4675_v54 = vpop.f32.mrb[46].mxu1  ;;  %v3379_v38 = vpop.eup %3378  ;;  %v2413_v28 = vadd.f32 %v2381_v12, %v2083_v60  ;;  %v2075_v19 = vadd.f32 %v4624_v37, %v4504_v30  ;;  %v2379_v33 = vmul.f32 %v2255_v47, %v1482_v10  ;;  %v4711_v26 = vmul.f32 %v4671_v59, %v4004_v27  ;;  %v5230_v59 = vld [vmem:[#allocation33_spill] sm:$0xff] }
 0x19e   : > { %v4682_v0 = vpop.f32.mrb[47].mxu0  ;;  %v4684_v6 = vpop.f32.mrb[47].mxu1  ;;  %5220 = vst [vmem:[#allocation5_spill] sm:$0xff] %v4700_v7  ;;  %v1985_v22 = vmul.f32 0.5, %v3379_v38  ;;  %v2384_v29 = vmul.f32 %v2276_v43, %v1487_v62  ;;  %v4713_v38 = vadd.f32 0.5, %v1982_v63  ;;  %3400 = vtanh.f32 %v1925_v49 }
 0x19f   : > { %v3381_v18 = vpop.eup %3380  ;;  %5221 = vst [vmem:[#allocation75_spill] sm:$0xff] %v4711_v26  ;;  %v4719_v11 = vmul.f32 0.5, %v3377_v41  ;;  %3402 = vtanh.f32 %v2413_v28  ;;  %v2411_v60 = vadd.f32 %v2379_v33, %v2075_v19  ;;  %v1485_v28 = vadd.f32 0.5, %v4290_v52  ;;  %v5228_v26 = vld [vmem:[#allocation13_spill] sm:$0xff] }
 0x1a0   : > { %v4691_v23 = vpop.eup %3382  ;;  %5222 = vst [vmem:[#allocation76_spill] sm:$0xff] %v4713_v38  ;;  %v2416_v10 = vadd.f32 %v2384_v29, %v2096_v57  ;;  %v4727_v27 = vadd.f32 0.5, %v1985_v22  ;;  %v4729_v63 = vmul.f32 0.5, %v3381_v18  ;;  %3404 = vtanh.f32 %v1923_v50 }
 0x1a1   : > { %5218 = vst [vmem:[#allocation74_spill] sm:$0xff] %v4691_v23  ;;  %v3385_v16 = vpop.eup %3384  ;;  %3406 = vtanh.f32 %v2411_v60  ;;  %v2088_v57 = vadd.f32 %v4624_v37, %v4543_v48  ;;  %v2268_v19 = vadd.f32 %v4635_v24, %v4545_v3  ;;  %v2099_v29 = vadd.f32 %v4555_v13, %v4624_v37 }
 0x1a2   : > { %v3387_v31 = vpop.eup %3386  ;;  %v4704_v21 = vpop.f32.mrb[48].mxu0  ;;  %5223 = vst [vmem:[#allocation77_spill] sm:$0xff] %v4727_v27  ;;  %v4731_v49 = vmul.f32 0.5, %v3385_v16  ;;  %3408 = vtanh.f32 %v2416_v10  ;;  %v1488_v48 = vadd.f32 0.5, %v4309_v34  ;;  %v2279_v52 = vadd.f32 %v4557_v20, %v4635_v24 }
 0x1a3   : > { %v4706_v2 = vpop.f32.mrb[48].mxu1  ;;  %v3389_v39 = vpop.eup %3388  ;;  %v4742_v22 = vmul.f32 0.5, %v3387_v31  ;;  %v2382_v33 = vmul.f32 %v2268_v19, %v1485_v28  ;;  %v2091_v3 = vadd.f32 %v4624_v37, %v4562_v42  ;;  %v5226_v31 = vld [vmem:[#allocation25_spill] sm:$0xff]  ;;  %v2112_v60 = vadd.f32 %v4598_v8, %v4624_v37 }
 0x1a4   : > { %v4715_v12 = vpop.f32.mrb[49].mxu0  ;;  %v4717_v35 = vpop.f32.mrb[49].mxu1  ;;  %v4744_v18 = vmul.f32 0.5, %v3389_v39  ;;  %v1486_v39 = vadd.f32 0.5, %v5226_v31  ;;  %v2385_v13 = vmul.f32 %v2279_v52, %v1488_v48  ;;  %v5227_v19 = vld [vmem:[#allocation29_spill] sm:$0xff]  ;;  %v2292_v20 = vadd.f32 %v4600_v14, %v4635_v24  ;;  %v5231_v14 = vld [vmem:[#allocation14_spill] sm:$0xff] }
 0x1a5   : > { %v3391_v30 = vpop.eup %3390  ;;  %v4721_v47 = vpop.f32.mrb[50].mxu0  ;;  %v2414_v28 = vadd.f32 %v2382_v33, %v2088_v57  ;;  %v1491_v34 = vadd.f32 0.5, %v5227_v19  ;;  %v2104_v8 = vadd.f32 %v4624_v37, %v4604_v4  ;;  %v1489_v57 = vadd.f32 0.5, %v5230_v59 }
 0x1a6   : > { %v4723_v62 = vpop.f32.mrb[50].mxu1  ;;  %v4725_v43 = vpop.eup %3392  ;;  %v4746_v16 = vmul.f32 0.5, %v3391_v30  ;;  %v2271_v30 = vadd.f32 %v4635_v24, %v4564_v5  ;;  %v5232_v52 = vsub.f32 1.0, %v5231_v14  ;;  %v2284_v32 = vadd.f32 %v4635_v24, %v4606_v55  ;;  %v5238_v55 = vld [vmem:[#allocation15_spill] sm:$0xff] }
 0x1a7   : > { %v4733_v23 = vpop.f32.mrb[51].mxu0  ;;  %v4735_v41 = vpop.f32.mrb[51].mxu1  ;;  %3410 = vtanh.f32 %v2414_v28 }
 0x1a8   : > { %5224 = vst [vmem:[#allocation78_spill] sm:$0xff] %v4746_v16  ;;  %v4748_v50 = vpop.eup %3394  ;;  %v2383_v38 = vmul.f32 %v2271_v30, %v1486_v39  ;;  %v5234_v30 = vld [vmem:[#allocation16_spill] sm:$0xff] }
 0x1a9   : > { %5225 = vst [vmem:[#allocation79_spill] sm:$0xff] %v4748_v50  ;;  %v3397_v10 = vpop.eup %3396  ;;  %v5229_v50 = vsub.f32 1.0, %v5228_v26  ;;  %v2417_v26 = vadd.f32 %v2385_v13, %v2099_v29 }
 0x1aa   : > { %v4765_v27 = vpop.f32.mrb[52].mxu0  ;;  %v4767_v42 = vpop.f32.mrb[52].mxu1  ;;  %v2415_v7 = vadd.f32 %v2383_v38, %v2091_v3  ;;  %v5239_v38 = vsub.f32 1.0, %v5238_v55 }
 0x1ab   : > { %v3399_v31 = vpop.eup %3398  ;;  %v2508_v5 = vmul.f32 %v3397_v10, %v5229_v50  ;;  %v4774_v33 = vpop.f32.mrb[53].mxu0  ;;  %v2388_v50 = vmul.f32 %v2292_v20, %v1491_v34  ;;  %v5235_v34 = vld [vmem:[#allocation17_spill] sm:$0xff]  ;;  %3412 = vtanh.f32 %v2417_v26  ;;  %v2287_v26 = vadd.f32 %v4635_v24, %v4628_v56 }
 0x1ac   : > { %v4776_v48 = vpop.f32.mrb[53].mxu1  ;;  %v2506_v19 = vmul.f32 %v3399_v31, %v5232_v52  ;;  %v4786_v39 = vpop.f32.mrb[54].mxu0  ;;  %v2115_v31 = vadd.f32 %v4612_v9, %v4624_v37  ;;  %v5236_v52 = vld [vmem:[#allocation36_spill] sm:$0xff]  ;;  %3414 = vtanh.f32 %v2415_v7  ;;  %v2386_v9 = vmul.f32 %v2284_v32, %v1489_v57  ;;  %v5241_v32 = vld [vmem:[#allocation18_spill] sm:$0xff] }
 0x1ad   : > { %v4788_v4 = vpop.f32.mrb[54].mxu1  ;;  %v4790_v59 = vpop.eup %3400  ;;  %v2572_v10 = vadd.f32 %v5234_v30, %v2508_v5  ;;  %v2420_v14 = vadd.f32 %v2388_v50, %v2112_v60  ;;  %v2295_v30 = vadd.f32 %v4614_v44, %v4635_v24  ;;  %v2107_v60 = vadd.f32 %v4624_v37, %v4626_v25 }
 0x1ae   : > { %5233 = vst [vmem:[#allocation25_spill] sm:$0xff] %v4790_v59  ;;  %v4797_v28 = vpop.f32.mrb[55].mxu0  ;;  %v4799_v29 = vpop.f32.mrb[55].mxu1  ;;  %v2570_v20 = vadd.f32 %v5235_v34, %v2506_v19  ;;  %v1492_v59 = vadd.f32 0.5, %v5236_v52  ;;  %v1490_v19 = vadd.f32 0.5, %v4414_v61  ;;  %v5242_v57 = vsub.f32 1.0, %v5241_v32 }
 0x1af   : > { %v3403_v13 = vpop.eup %3402  ;;  %2604 = vst.msk [vmem:[%s4782_s20 + $0x10] sm:$0xff] %vm922_vm1, %v2572_v10  ;;  %3416 = vtanh.f32 %v2420_v14  ;;  %v5240_v10 = vld [vmem:[#allocation20_spill] sm:$0xff]  ;;  %v2418_v44 = vadd.f32 %v2386_v9, %v2104_v8  ;;  %v5243_v52 = vld [vmem:[#allocation19_spill] sm:$0xff]  ;;  %v2128_v25 = vadd.f32 %v4655_v58, %v4624_v37 }
 0x1b0   : > { %v4803_v5 = vpop.eup %3404  ;;  %v2509_v3 = vmul.f32 %v3403_v13, %v5239_v38  ;;  %2602 = vst.msk [vmem:[%s4782_s20] sm:$0xff] %vm922_vm1, %v2570_v20  ;;  %v2389_v34 = vmul.f32 %v2295_v30, %v1492_v59  ;;  %v5244_v20 = vsub.f32 1.0, %v5243_v52  ;;  %v2387_v14 = vmul.f32 %v2287_v26, %v1490_v19  ;;  %v5245_v38 = vld [vmem:[#allocation40_spill] sm:$0xff] }
 0x1b1   : > { %5237 = vst [vmem:[#allocation29_spill] sm:$0xff] %v4803_v5  ;;  %v3407_v16 = vpop.eup %3406  ;;  %v1495_v61 = vadd.f32 0.5, %v5245_v38  ;;  %3418 = vtanh.f32 %v2418_v44  ;;  %v2308_v59 = vadd.f32 %v4657_v46, %v4635_v24  ;;  %v5247_v30 = vld [vmem:[#allocation24_spill] sm:$0xff] }
 0x1b2   : > { %v3409_v50 = vpop.eup %3408  ;;  %v2573_v7 = vadd.f32 %v5240_v10, %v2509_v3  ;;  %v2507_v13 = vmul.f32 %v3407_v16, %v5242_v57  ;;  %v4826_v5 = vpop.f32.mrb[56].mxu0  ;;  %v5246_v3 = vld [vmem:[#allocation21_spill] sm:$0xff]  ;;  %v2421_v8 = vadd.f32 %v2389_v34, %v2115_v31  ;;  %v2419_v26 = vadd.f32 %v2387_v14, %v2107_v60  ;;  %v5248_v10 = vld [vmem:[#allocation42_spill] sm:$0xff]  ;;  %v5249_v34 = vld [vmem:[#allocation44_spill] sm:$0xff] }
 0x1b3   : > { %v2512_v55 = vmul.f32 %v3409_v50, %v5244_v20  ;;  %v4828_v56 = vpop.f32.mrb[56].mxu1  ;;  %v4835_v9 = vpop.f32.mrb[57].mxu0  ;;  %v2120_v50 = vadd.f32 %v4624_v37, %v4666_v40  ;;  %v2392_v46 = vmul.f32 %v2308_v59, %v1495_v61  ;;  %v2300_v31 = vadd.f32 %v4635_v24, %v4668_v53  ;;  %v5250_v53 = vld [vmem:[#allocation22_spill] sm:$0xff] }
 0x1b4   : > { %2605 = vst.msk [vmem:[%s4782_s20 + $0x18] sm:$0xff] %vm922_vm1, %v2573_v7  ;;  %v2571_v16 = vadd.f32 %v5246_v3, %v2507_v13  ;;  %v4837_v58 = vpop.f32.mrb[57].mxu1  ;;  %v1493_v7 = vadd.f32 0.5, %v5248_v10  ;;  %v4843_v32 = vpop.f32.mrb[58].mxu0  ;;  %3420 = vtanh.f32 %v2421_v8  ;;  %v2131_v13 = vadd.f32 %v4673_v17, %v4624_v37  ;;  %v5252_v3 = vld [vmem:[#allocation48_spill] sm:$0xff] }
 0x1b5   : > { %v2576_v19 = vadd.f32 %v5247_v30, %v2512_v55  ;;  %v4845_v57 = vpop.f32.mrb[58].mxu1  ;;  %v4853_v60 = vpop.f32.mrb[59].mxu0  ;;  %3422 = vtanh.f32 %v2419_v26  ;;  %v1496_v52 = vadd.f32 0.5, %v5249_v34  ;;  %v2311_v20 = vadd.f32 %v4675_v54, %v4635_v24  ;;  %v5253_v54 = vld [vmem:[#allocation51_spill] sm:$0xff] }
 0x1b6   : > { %2603 = vst.msk [vmem:[%s4782_s20 + $0x8] sm:$0xff] %vm922_vm1, %v2571_v16  ;;  %v4855_v44 = vpop.f32.mrb[59].mxu1  ;;  %v3411_v40 = vpop.eup %3410  ;;  %v2123_v55 = vadd.f32 %v4624_v37, %v4682_v0  ;;  %v5251_v14 = vsub.f32 1.0, %v5250_v53  ;;  %v2424_v17 = vadd.f32 %v2392_v46, %v2128_v25  ;;  %v2390_v61 = vmul.f32 %v2300_v31, %v1493_v7  ;;  %v5254_v0 = vld [vmem:[#allocation26_spill] sm:$0xff]  ;;  %v5255_v53 = vld [vmem:[#allocation23_spill] sm:$0xff] }
 0x1b7   : > { %2608 = vst.msk [vmem:[%s4782_s20 + $0x30] sm:$0xff] %vm922_vm1, %v2576_v19  ;;  %v1494_v16 = vadd.f32 0.5, %v5252_v3  ;;  %v3413_v8 = vpop.eup %3412  ;;  %v2393_v59 = vmul.f32 %v2311_v20, %v1496_v52  ;;  %v2303_v30 = vadd.f32 %v4635_v24, %v4684_v6  ;;  %v2144_v19 = vadd.f32 %v4704_v21, %v4624_v37  ;;  %v5257_v31 = vld [vmem:[#allocation27_spill] sm:$0xff] }
 0x1b8   : > { %v2510_v38 = vmul.f32 %v3411_v40, %v5251_v14  ;;  %v1499_v26 = vadd.f32 0.5, %v5253_v54  ;;  %v3415_v10 = vpop.eup %3414  ;;  %v5256_v40 = vsub.f32 1.0, %v5255_v53  ;;  %3424 = vtanh.f32 %v2424_v17  ;;  %v5260_v17 = vld [vmem:[#allocation30_spill] sm:$0xff] }
 0x1b9   : > { %v2422_v7 = vadd.f32 %v2390_v61, %v2120_v50  ;;  %v3417_v46 = vpop.eup %3416  ;;  %v5258_v52 = vsub.f32 1.0, %v5257_v31  ;;  %v2425_v14 = vadd.f32 %v2393_v59, %v2131_v13  ;;  %v2391_v3 = vmul.f32 %v2303_v30, %v1494_v16  ;;  %v5262_v59 = vld [vmem:[#allocation31_spill] sm:$0xff] }
 0x1ba   : > { %v2574_v34 = vadd.f32 %v5254_v0, %v2510_v38  ;;  %v2513_v25 = vmul.f32 %v3413_v8, %v5256_v40  ;;  %v2324_v6 = vadd.f32 %v4706_v2, %v4635_v24  ;;  %v4879_v21 = vpop.f32.mrb[60].mxu0  ;;  %v4881_v54 = vpop.f32.mrb[60].mxu1  ;;  %v5259_v38 = vld [vmem:[#allocation28_spill] sm:$0xff]  ;;  %v5261_v50 = vsub.f32 1.0, %v5260_v17 }
 0x1bb   : > { %v2511_v20 = vmul.f32 %v3415_v10, %v5258_v52  ;;  %3426 = vtanh.f32 %v2422_v7  ;;  %v2136_v13 = vadd.f32 %v4624_v37, %v4715_v12  ;;  %v4890_v16 = vpop.f32.mrb[61].mxu0  ;;  %v4892_v2 = vpop.f32.mrb[61].mxu1  ;;  %v2423_v10 = vadd.f32 %v2391_v3, %v2123_v55  ;;  %v5264_v52 = vld [vmem:[#allocation32_spill] sm:$0xff] }
 0x1bc   : > { %2606 = vst.msk [vmem:[%s4782_s20 + $0x20] sm:$0xff] %vm922_vm1, %v2574_v34  ;;  %v2577_v8 = vadd.f32 %v5259_v38, %v2513_v25  ;;  %v2516_v61 = vmul.f32 %v3417_v46, %v5261_v50  ;;  %3428 = vtanh.f32 %v2425_v14  ;;  %v2396_v0 = vmul.f32 %v2324_v6, %v1499_v26  ;;  %v4895_v34 = vpop.f32.mrb[62].mxu0  ;;  %v4897_v53 = vpop.f32.mrb[62].mxu1  ;;  %v5263_v25 = vld [vmem:[#allocation34_spill] sm:$0xff] }
 0x1bd   : > { %v2575_v30 = vadd.f32 %v5262_v59, %v2511_v20  ;;  %v3419_v40 = vpop.eup %3418  ;;  %v1497_v7 = vadd.f32 0.5, %v4521_v36  ;;  %v2316_v46 = vadd.f32 %v4635_v24, %v4717_v35  ;;  %v2147_v31 = vadd.f32 %v4721_v47, %v4624_v37  ;;  %v4907_v55 = vpop.f32.mrb[63].mxu0 }
 0x1be   : > { %2609 = vst.msk [vmem:[%s4782_s20 + $0x38] sm:$0xff] %vm922_vm1, %v2577_v8  ;;  %v2580_v12 = vadd.f32 %v5263_v25, %v2516_v61  ;;  %v4909_v26 = vpop.f32.mrb[63].mxu1  ;;  %v5265_v20 = vsub.f32 1.0, %v5264_v52  ;;  %3430 = vtanh.f32 %v2423_v10  ;;  %v2428_v3 = vadd.f32 %v2396_v0, %v2144_v19  ;;  %v3421_v36 = vpop.eup %3420  ;;  %v5266_v8 = vld [vmem:[#allocation59_spill] sm:$0xff]  ;;  %v5267_v61 = vld [vmem:[#allocation37_spill] sm:$0xff]  ;;  %v5270_v0 = vld [vmem:[#allocation38_spill] sm:$0xff] }
 0x1bf   : > { %2607 = vst.msk [vmem:[%s4782_s20 + $0x28] sm:$0xff] %vm922_vm1, %v2575_v30  ;;  %v1500_v6 = vadd.f32 0.5, %v4539_v45  ;;  %v2394_v35 = vmul.f32 %v2316_v46, %v1497_v7  ;;  %v2327_v47 = vadd.f32 %v4723_v62, %v4635_v24  ;;  %v2139_v38 = vadd.f32 %v4624_v37, %v4733_v23  ;;  %v3423_v50 = vpop.eup %3422  ;;  %v5268_v30 = vld [vmem:[#allocation35_spill] sm:$0xff] }
 0x1c0   : > { %v2514_v14 = vmul.f32 %v3419_v40, %v5265_v20  ;;  %2612 = vst.msk [vmem:[%s4782_s20 + $0x50] sm:$0xff] %vm922_vm1, %v2580_v12  ;;  %v1498_v17 = vadd.f32 0.5, %v5266_v8  ;;  %v5269_v19 = vsub.f32 1.0, %v5268_v30  ;;  %3432 = vtanh.f32 %v2428_v3  ;;  %v5272_v7 = vld [vmem:[#allocation39_spill] sm:$0xff]  ;;  %v5277_v30 = vld [vmem:[#allocation45_spill] sm:$0xff] }
 0x1c1   : > { %v2319_v45 = vadd.f32 %v4635_v24, %v4735_v41  ;;  %v5271_v40 = vsub.f32 1.0, %v5270_v0  ;;  %v2426_v62 = vadd.f32 %v2394_v35, %v2136_v13  ;;  %v2397_v12 = vmul.f32 %v2327_v47, %v1500_v6  ;;  %v5273_v3 = vld [vmem:[#allocation43_spill] sm:$0xff] }
 0x1c2   : > { %v2578_v59 = vadd.f32 %v5267_v61, %v2514_v14  ;;  %v2517_v10 = vmul.f32 %v3421_v36, %v5269_v19  ;;  %v2160_v23 = vadd.f32 %v4765_v27, %v4624_v37  ;;  %v1503_v20 = vadd.f32 0.5, %v4574_v1  ;;  %v3425_v41 = vpop.eup %3424  ;;  %v5274_v27 = vld [vmem:[#allocation41_spill] sm:$0xff]  ;;  %v5280_v0 = vld [vmem:[#allocation47_spill] sm:$0xff] }
 0x1c3   : > { %v2515_v25 = vmul.f32 %v3423_v50, %v5271_v40  ;;  %v2395_v52 = vmul.f32 %v2319_v45, %v1498_v17  ;;  %v2340_v14 = vadd.f32 %v4767_v42, %v4635_v24  ;;  %3434 = vtanh.f32 %v2426_v62 }
 0x1c4   : > { %2610 = vst.msk [vmem:[%s4782_s20 + $0x40] sm:$0xff] %vm922_vm1, %v2578_v59  ;;  %v2581_v46 = vadd.f32 %v5272_v7, %v2517_v10  ;;  %v2429_v13 = vadd.f32 %v2397_v12, %v2147_v31  ;;  %v2152_v6 = vadd.f32 %v4624_v37, %v4774_v33  ;;  %v5275_v35 = vsub.f32 1.0, %v5274_v27  ;;  %v5276_v31 = vld [vmem:[#allocation66_spill] sm:$0xff] }
 0x1c5   : > { %v2579_v36 = vadd.f32 %v5273_v3, %v2515_v25  ;;  %v2427_v8 = vadd.f32 %v2395_v52, %v2139_v38  ;;  %v2400_v17 = vmul.f32 %v2340_v14, %v1503_v20  ;;  %v1501_v1 = vadd.f32 0.5, %v4576_v51  ;;  %v3427_v50 = vpop.eup %3426  ;;  %v5278_v38 = vld [vmem:[#allocation46_spill] sm:$0xff]  ;;  %v5283_v52 = vld [vmem:[#allocation68_spill] sm:$0xff]  ;;  %v5284_v14 = vld [vmem:[#allocation53_spill] sm:$0xff] }
 0x1c6   : > { %2613 = vst.msk [vmem:[%s4782_s20 + $0x58] sm:$0xff] %vm922_vm1, %v2581_v46  ;;  %v2520_v47 = vmul.f32 %v3425_v41, %v5275_v35  ;;  %3436 = vtanh.f32 %v2429_v13  ;;  %v2332_v42 = vadd.f32 %v4635_v24, %v4776_v48  ;;  %v2163_v33 = vadd.f32 %v4786_v39, %v4624_v37  ;;  %v3429_v59 = vpop.eup %3428  ;;  %v5282_v7 = vld [vmem:[#allocation50_spill] sm:$0xff]  ;;  %v5285_v3 = vld [vmem:[#allocation49_spill] sm:$0xff] }
 0x1c7   : > { %2611 = vst.msk [vmem:[%s4782_s20 + $0x48] sm:$0xff] %vm922_vm1, %v2579_v36  ;;  %v1504_v61 = vadd.f32 0.5, %v5276_v31  ;;  %v5279_v10 = vsub.f32 1.0, %v5278_v38  ;;  %3438 = vtanh.f32 %v2427_v8  ;;  %v2432_v51 = vadd.f32 %v2400_v17, %v2160_v23  ;;  %v5287_v8 = vld [vmem:[#allocation70_spill] sm:$0xff] }
 0x1c8   : > { %v2584_v19 = vadd.f32 %v5277_v30, %v2520_v47  ;;  %v5281_v40 = vsub.f32 1.0, %v5280_v0  ;;  %v2398_v62 = vmul.f32 %v2332_v42, %v1501_v1  ;;  %v2343_v48 = vadd.f32 %v4788_v4, %v4635_v24  ;;  %v3431_v12 = vpop.eup %3430  ;;  %v5288_v1 = vld [vmem:[#allocation55_spill] sm:$0xff]  ;;  %v5289_v42 = vld [vmem:[#allocation52_spill] sm:$0xff] }
 0x1c9   : > { %v2518_v45 = vmul.f32 %v3427_v50, %v5279_v10  ;;  %v2155_v39 = vadd.f32 %v4624_v37, %v4797_v28  ;;  %3440 = vtanh.f32 %v2432_v51  ;;  %v1502_v23 = vadd.f32 0.5, %v5283_v52  ;;  %v5292_v51 = vld [vmem:[#allocation54_spill] sm:$0xff] }
 0x1ca   : > { %v2521_v25 = vmul.f32 %v3429_v59, %v5281_v40  ;;  %2616 = vst.msk [vmem:[%s4782_s20 + $0x70] sm:$0xff] %vm922_vm1, %v2584_v19  ;;  %v2335_v20 = vadd.f32 %v4635_v24, %v4799_v29  ;;  %v5286_v36 = vsub.f32 1.0, %v5285_v3  ;;  %v2430_v13 = vadd.f32 %v2398_v62, %v2152_v6  ;;  %v3433_v28 = vpop.eup %3432 }
 0x1cb   : > { %v2582_v46 = vadd.f32 %v5282_v7, %v2518_v45  ;;  %v2401_v27 = vmul.f32 %v2343_v48, %v1504_v61  ;;  %v2176_v47 = vadd.f32 %v4826_v5, %v4624_v37  ;;  %v1507_v17 = vadd.f32 0.5, %v5287_v8 }
 0x1cc   : > { %v2585_v41 = vadd.f32 %v5284_v14, %v2521_v25  ;;  %v2519_v4 = vmul.f32 %v3431_v12, %v5286_v36  ;;  %v2399_v35 = vmul.f32 %v2335_v20, %v1502_v23  ;;  %v2356_v29 = vadd.f32 %v4828_v56, %v4635_v24  ;;  %v5291_v56 = vld [vmem:[#allocation57_spill] sm:$0xff]  ;;  %v5294_v12 = vld [vmem:[#allocation58_spill] sm:$0xff]  ;;  %v5297_v20 = vld [vmem:[#allocation60_spill] sm:$0xff] }
 0x1cd   : > { %2614 = vst.msk [vmem:[%s4782_s20 + $0x60] sm:$0xff] %vm922_vm1, %v2582_v46  ;;  %v5290_v6 = vsub.f32 1.0, %v5289_v42  ;;  %3442 = vtanh.f32 %v2430_v13  ;;  %v2433_v61 = vadd.f32 %v2401_v27, %v2163_v33  ;;  %v2168_v5 = vadd.f32 %v4624_v37, %v4835_v9  ;;  %v3435_v38 = vpop.eup %3434  ;;  %v5295_v46 = vld [vmem:[#allocation56_spill] sm:$0xff]  ;;  %v5299_v36 = vld [vmem:[#allocation61_spill] sm:$0xff] }
 0x1ce   : > { %2617 = vst.msk [vmem:[%s4782_s20 + $0x78] sm:$0xff] %vm922_vm1, %v2585_v41  ;;  %v2583_v50 = vadd.f32 %v5288_v1, %v2519_v4  ;;  %v2431_v59 = vadd.f32 %v2399_v35, %v2155_v39  ;;  %v2404_v30 = vmul.f32 %v2356_v29, %v1507_v17  ;;  %v1505_v19 = vadd.f32 0.5, %v4664_v15 }
 0x1cf   : > { %v2524_v31 = vmul.f32 %v3433_v28, %v5290_v6  ;;  %3444 = vtanh.f32 %v2433_v61  ;;  %v2348_v45 = vadd.f32 %v4635_v24, %v4837_v58  ;;  %v2179_v33 = vadd.f32 %v4843_v32, %v4624_v37  ;;  %v5300_v28 = vld [vmem:[#allocation63_spill] sm:$0xff] }
 0x1d0   : > { %2615 = vst.msk [vmem:[%s4782_s20 + $0x68] sm:$0xff] %vm922_vm1, %v2583_v50  ;;  %v5293_v0 = vsub.f32 1.0, %v5292_v51  ;;  %3446 = vtanh.f32 %v2431_v59  ;;  %v2436_v25 = vadd.f32 %v2404_v30, %v2176_v47  ;;  %v1508_v9 = vadd.f32 0.5, %v4719_v11  ;;  %v3437_v15 = vpop.eup %3436  ;;  %v5301_v47 = vld [vmem:[#allocation62_spill] sm:$0xff] }
 0x1d1   : > { %v2588_v10 = vadd.f32 %v5291_v56, %v2524_v31  ;;  %v2402_v62 = vmul.f32 %v2348_v45, %v1505_v19  ;;  %v2359_v48 = vadd.f32 %v4845_v57, %v4635_v24  ;;  %v2171_v58 = vadd.f32 %v4624_v37, %v4853_v60  ;;  %v3439_v39 = vpop.eup %3438 }
 0x1d2   : > { %v2522_v40 = vmul.f32 %v3435_v38, %v5293_v0  ;;  %v1506_v32 = vadd.f32 0.5, %v4729_v63  ;;  %v5296_v52 = vsub.f32 1.0, %v5295_v46  ;;  %3448 = vtanh.f32 %v2436_v25  ;;  %v5308_v0 = vld [vmem:[#allocation67_spill] sm:$0xff] }
 0x1d3   : > { %2620 = vst.msk [vmem:[%s4782_s20 + $0x90] sm:$0xff] %vm922_vm1, %v2588_v10  ;;  %v2351_v11 = vadd.f32 %v4635_v24, %v4855_v44  ;;  %v5298_v14 = vsub.f32 1.0, %v5297_v20  ;;  %v2434_v57 = vadd.f32 %v2402_v62, %v2168_v5  ;;  %v2405_v3 = vmul.f32 %v2359_v48, %v1508_v9  ;;  %v3441_v63 = vpop.eup %3440  ;;  %v5305_v5 = vld [vmem:[#allocation64_spill] sm:$0xff]  ;;  %v5311_v62 = vld [vmem:[#allocation71_spill] sm:$0xff] }
 0x1d4   : > { %v2586_v7 = vadd.f32 %v5294_v12, %v2522_v40  ;;  %v2525_v23 = vmul.f32 %v3437_v15, %v5296_v52  ;;  %v2192_v60 = vadd.f32 %v4879_v21, %v4624_v37  ;;  %v1511_v27 = vadd.f32 0.5, %v4731_v49  ;;  %v5303_v21 = vld [vmem:[#allocation74_spill] sm:$0xff]  ;;  %v5309_v40 = vld [vmem:[#allocation69_spill] sm:$0xff] }
 0x1d5   : > { %v2523_v41 = vmul.f32 %v3439_v39, %v5298_v14  ;;  %v2403_v13 = vmul.f32 %v2351_v11, %v1506_v32  ;;  %v2372_v44 = vadd.f32 %v4881_v54, %v4635_v24  ;;  %v5302_v8 = vsub.f32 1.0, %v5301_v47  ;;  %v5304_v54 = vld [vmem:[#allocation65_spill] sm:$0xff] }
 0x1d6   : > { %2618 = vst.msk [vmem:[%s4782_s20 + $0x80] sm:$0xff] %vm922_vm1, %v2586_v7  ;;  %v2589_v4 = vadd.f32 %v5299_v36, %v2525_v23  ;;  %3450 = vtanh.f32 %v2434_v57  ;;  %v2437_v29 = vadd.f32 %v2405_v3, %v2179_v33  ;;  %v1983_v1 = vmul.f32 0.5, %v5303_v21  ;;  %v5307_v33 = vld [vmem:[#allocation78_spill] sm:$0xff]  ;;  %v5313_v7 = vld [vmem:[#allocation72_spill] sm:$0xff]  ;;  %v5315_v11 = vld [vmem:[#allocation73_spill] sm:$0xff] }
 0x1d7   : > { %v2587_v35 = vadd.f32 %v5300_v28, %v2523_v41  ;;  %v2528_v17 = vmul.f32 %v3441_v63, %v5302_v8  ;;  %v2435_v50 = vadd.f32 %v2403_v13, %v2171_v58  ;;  %v2408_v42 = vmul.f32 %v2372_v44, %v1511_v27  ;;  %v3443_v6 = vpop.eup %3442  ;;  %v5318_v3 = vld [vmem:[#allocation79_spill] sm:$0xff]  ;;  %v5321_v44 = vld [vmem:[#allocation77_spill] sm:$0xff] }
 0x1d8   : > { %2621 = vst.msk [vmem:[%s4782_s20 + $0x98] sm:$0xff] %vm922_vm1, %v2589_v4  ;;  %v2184_v49 = vadd.f32 %v4624_v37, %v4890_v16  ;;  %3452 = vtanh.f32 %v2437_v29  ;;  %v1509_v61 = vadd.f32 0.5, %v4742_v22  ;;  %v2364_v59 = vadd.f32 %v4635_v24, %v4892_v2  ;;  %v5319_v4 = vld [vmem:[#allocation6_spill] sm:$0xff]  ;;  %v5320_v13 = vld [vmem:[#allocation75_spill] sm:$0xff]  ;;  %v5323_v21 = vld [vmem:[#allocation29_spill] sm:$0xff] }
 0x1d9   : > { %2619 = vst.msk [vmem:[%s4782_s20 + $0x88] sm:$0xff] %vm922_vm1, %v2587_v35  ;;  %v2592_v31 = vadd.f32 %v5304_v54, %v2528_v17  ;;  %v1988_v30 = vmul.f32 0.5, %v4725_v43  ;;  %v5306_v19 = vsub.f32 1.0, %v5305_v5  ;;  %3454 = vtanh.f32 %v2435_v50  ;;  %v3445_v10 = vpop.eup %3444  ;;  %v5322_v35 = vld [vmem:[#allocation25_spill] sm:$0xff] }
 0x1da   : > { %v2440_v56 = vadd.f32 %v2408_v42, %v2192_v60  ;;  %v2406_v16 = vmul.f32 %v2364_v59, %v1509_v61  ;;  %v1512_v45 = vadd.f32 0.5, %v4744_v18  ;;  %v2375_v22 = vadd.f32 %v4897_v53, %v4635_v24  ;;  %v3447_v2 = vpop.eup %3446  ;;  %v5324_v42 = vld [vmem:[#allocation8_spill] sm:$0xff]  ;;  %v5325_v61 = vld [vmem:[#allocation7_spill] sm:$0xff] }
 0x1db   : > { %v2526_v38 = vmul.f32 %v3443_v6, %v5306_v19  ;;  %2624 = vst.msk [vmem:[%s4782_s20 + $0xb0] sm:$0xff] %vm922_vm1, %v2592_v31  ;;  %v1510_v51 = vadd.f32 0.5, %v5307_v33  ;;  %v5310_v25 = vsub.f32 1.0, %v5309_v40  ;;  %v2367_v15 = vadd.f32 %v4635_v24, %v4909_v26  ;;  %v5314_v26 = vld [vmem:[#allocation5_spill] sm:$0xff] }
 0x1dc   : > { %3456 = vtanh.f32 %v2440_v56  ;;  %v5312_v48 = vsub.f32 1.0, %v5311_v62  ;;  %v2438_v18 = vadd.f32 %v2406_v16, %v2184_v49  ;;  %v2195_v53 = vadd.f32 %v4895_v34, %v4624_v37  ;;  %v3449_v39 = vpop.eup %3448  ;;  %v5317_v34 = vld [vmem:[#allocation76_spill] sm:$0xff] }
 0x1dd   : > { %v2590_v43 = vadd.f32 %v5308_v0, %v2526_v38  ;;  %v2529_v9 = vmul.f32 %v3445_v10, %v5310_v25  ;;  %v2409_v32 = vmul.f32 %v2375_v22, %v1512_v45  ;;  %v2015_v12 = vadd.f32 0.5, %v1983_v1  ;;  %v5326_v10 = vld [vmem:[#allocation11_spill] sm:$0xff] }
 0x1de   : > { %v2527_v58 = vmul.f32 %v3447_v2, %v5312_v48  ;;  %v2187_v52 = vadd.f32 %v4624_v37, %v4907_v55  ;;  %v2407_v24 = vmul.f32 %v2367_v15, %v1510_v51  ;;  %v5316_v20 = vsub.f32 1.0, %v5315_v11 }
 0x1df   : > { %2622 = vst.msk [vmem:[%s4782_s20 + $0xa0] sm:$0xff] %vm922_vm1, %v2590_v43  ;;  %v2593_v46 = vadd.f32 %v5313_v7, %v2529_v9  ;;  %3458 = vtanh.f32 %v2438_v18  ;;  %v2441_v41 = vadd.f32 %v2409_v32, %v2195_v53  ;;  %v2498_v57 = vsub.f32 1.0, %v5317_v34  ;;  %v5327_v43 = vld [vmem:[#allocation9_spill] sm:$0xff] }
 0x1e0   : > { %v2591_v23 = vadd.f32 %v5314_v26, %v2527_v58  ;;  %v2532_v14 = vmul.f32 %v3449_v39, %v5316_v20  ;;  %v1986_v60 = vmul.f32 0.5, %v5318_v3  ;;  %v2439_v63 = vadd.f32 %v2407_v24, %v2187_v52  ;;  %v3451_v36 = vpop.eup %3450  ;;  %v5328_v58 = vld [vmem:[#allocation12_spill] sm:$0xff]  ;;  %v5329_v39 = vld [vmem:[#allocation10_spill] sm:$0xff] }
 0x1e1   : > { %2625 = vst.msk [vmem:[%s4782_s20 + $0xb8] sm:$0xff] %vm922_vm1, %v2593_v46  ;;  %v2562_v37 = vmul.f32 %v5317_v34, %v5319_v4  ;;  %v2020_v55 = vadd.f32 0.5, %v1988_v30  ;;  %3460 = vtanh.f32 %v2441_v41  ;;  %v2501_v28 = vsub.f32 1.0, %v5321_v44 }
 0x1e2   : > { %2623 = vst.msk [vmem:[%s4782_s20 + $0xa8] sm:$0xff] %vm922_vm1, %v2591_v23  ;;  %v2596_v27 = vadd.f32 %v5320_v13, %v2532_v14  ;;  %v1989_v47 = vmul.f32 0.5, %v5322_v35  ;;  %v2530_v8 = vmul.f32 %v3451_v36, %v2498_v57  ;;  %3462 = vtanh.f32 %v2439_v63  ;;  %v3453_v17 = vpop.eup %3452 }
 0x1e3   : > { %v2499_v29 = vsub.f32 1.0, %v2015_v12  ;;  %v1987_v1 = vmul.f32 0.5, %v5323_v21  ;;  %v3455_v50 = vpop.eup %3454  ;;  %v2565_v49 = vmul.f32 %v5321_v44, %v5324_v42  ;;  %v2018_v6 = vadd.f32 0.5, %v1986_v60 }
 0x1e4   : > { %2628 = vst.msk [vmem:[%s4782_s20 + $0xd0] sm:$0xff] %vm922_vm1, %v2596_v27  ;;  %v2594_v54 = vadd.f32 %v2562_v37, %v2530_v8  ;;  %v2533_v31 = vmul.f32 %v3453_v17, %v2501_v28  ;;  %v2563_v59 = vmul.f32 %v2015_v12, %v5325_v61  ;;  %v2504_v30 = vsub.f32 1.0, %v2020_v55 }
 0x1e5   : > { %v2531_v5 = vmul.f32 %v3455_v50, %v2499_v29  ;;  %v2021_v38 = vadd.f32 0.5, %v1989_v47  ;;  %v2568_v16 = vmul.f32 %v2020_v55, %v5326_v10  ;;  %v2019_v45 = vadd.f32 0.5, %v1987_v1 }
 0x1e6   : > { %v3457_v19 = vpop.eup %3456  ;;  %2626 = vst.msk [vmem:[%s4782_s20 + $0xc0] sm:$0xff] %vm922_vm1, %v2594_v54  ;;  %v2597_v56 = vadd.f32 %v2565_v49, %v2533_v31  ;;  %v2502_v51 = vsub.f32 1.0, %v2018_v6  ;;  %v2566_v40 = vmul.f32 %v2018_v6, %v5327_v43 }
 0x1e7   : > { %v2595_v22 = vadd.f32 %v2563_v59, %v2531_v5  ;;  %v2536_v33 = vmul.f32 %v3457_v19, %v2504_v30  ;;  %v2505_v25 = vsub.f32 1.0, %v2021_v38  ;;  %v2503_v62 = vsub.f32 1.0, %v2019_v45 }
 0x1e8   : > { %2629 = vst.msk [vmem:[%s4782_s20 + $0xd8] sm:$0xff] %vm922_vm1, %v2597_v56  ;;  %v2569_v18 = vmul.f32 %v2021_v38, %v5328_v58  ;;  %v2567_v12 = vmul.f32 %v2019_v45, %v5329_v39 }
 0x1e9   : > { %v3459_v2 = vpop.eup %3458  ;;  %2627 = vst.msk [vmem:[%s4782_s20 + $0xc8] sm:$0xff] %vm922_vm1, %v2595_v22  ;;  %v2600_v0 = vadd.f32 %v2568_v16, %v2536_v33 }
 0x1ea   : > { %v2534_v9 = vmul.f32 %v3459_v2, %v2502_v51 }
 0x1eb   : > { %v3461_v15 = vpop.eup %3460  ;;  %2632 = vst.msk [vmem:[%s4782_s20 + $0xf0] sm:$0xff] %vm922_vm1, %v2600_v0 }
 0x1ec   : > { %v3463_v48 = vpop.eup %3462  ;;  %v2598_v53 = vadd.f32 %v2566_v40, %v2534_v9  ;;  %v2537_v32 = vmul.f32 %v3461_v15, %v2505_v25 }
 0x1ed   : > { %v2535_v7 = vmul.f32 %v3463_v48, %v2503_v62 }
 0x1ee   : > { %2630 = vst.msk [vmem:[%s4782_s20 + $0xe0] sm:$0xff] %vm922_vm1, %v2598_v53  ;;  %v2601_v46 = vadd.f32 %v2569_v18, %v2537_v32 }
 0x1ef   : > { %v2599_v52 = vadd.f32 %v2567_v12, %v2535_v7 }
 0x1f0   : > { %2633 = vst.msk [vmem:[%s4782_s20 + $0xf8] sm:$0xff] %vm922_vm1, %v2601_v46 }
 0x1f1   : > { %2631 = vst.msk [vmem:[%s4782_s20 + $0xe8] sm:$0xff] %vm922_vm1, %v2599_v52 }
 0x1f2 PF: > { %s26_s18 = sadd.s32 1, %s3489_s18  }
 0x1f3   : > { %p23_p1 = scmp.ge.s32.totalorder %s26_s18, 4  }
 0x1f5   :  { %25 = sbr.rel (!%p23_p1) target bundleno = 1 (0x1), region = 124 }
 0x1fc   :  { %2656 = vsyncpa [#allocation3], 1 }
 0x1fd   :  { %2658 = vsyncpa [#allocation3 + $0x1], 1 }

</bundles_post_ra>
